<compile_context>
chip_gen: v5e
topology: v5e:2x2
jax: 0.10.0
libtpu: 0.0.40
codegen_flags: <defaults>
</compile_context>

<pallas_src>
import jax
import jax.numpy as jnp
from jax.experimental import pallas as pl
from jax.experimental.pallas import tpu as pltpu


# ----------------------------------------------------------------------------
# Fused kernel builder.
# ----------------------------------------------------------------------------
def make_fused_kernel(T, B, V, E, H, num_layers):
    n_lstm = 3 * num_layers

    def kernel(tok_ref, emb_ref, *refs):
        lstm_refs = refs[:n_lstm]
        (w1_ref, b1_ref, w2_ref, b2_ref, w3_ref, b3_ref,
         gamma_ref, beta_ref) = refs[n_lstm:n_lstm + 8]
        out_ref = refs[n_lstm + 8]

        f32 = jnp.float32
        bf16 = jnp.bfloat16

        # ---- 1) Embedding gather as a one-hot matmul (vectorized) ----------
        ids = tok_ref[...]                                       # (T*B, 1) int32
        iota = jax.lax.broadcasted_iota(jnp.int32, (T * B, V), 1)
        onehot = (iota == ids).astype(f32)                       # (T*B, V)
        x_all = jnp.dot(onehot, emb_ref[...],
                        preferred_element_type=f32)              # (T*B, E) time-major

        # ---- 2) Stacked LSTM, wavefront over (t, layer), register-resident -
        wih = [lstm_refs[3 * l][...] for l in range(num_layers)]      # (D_in,4H) bf16
        whh = [lstm_refs[3 * l + 1][...] for l in range(num_layers)]  # (H,4H)   bf16
        bias = [lstm_refs[3 * l + 2][...] for l in range(num_layers)] # (1,4H)   f32

        # Hoisted layer-0 input projection for ALL timesteps (one MXU matmul,
        # bias folded in once).
        xg0 = jnp.dot(x_all.astype(bf16), wih[0],
                      preferred_element_type=f32) + bias[0]      # (T*B, 4H)

        h = [jnp.zeros((B, H), f32) for _ in range(num_layers)]
        c = [jnp.zeros((B, H), f32) for _ in range(num_layers)]

        def cell(g, c_prev):
            # gates packed [i | f | o | g]: one sigmoid slab, one tanh slab
            sig = jax.nn.sigmoid(g[:, :3 * H])
            i_g = sig[:, 0:H]
            f_g = sig[:, H:2 * H]
            o_g = sig[:, 2 * H:3 * H]
            g_g = jnp.tanh(g[:, 3 * H:4 * H])
            c_new = f_g * c_prev + i_g * g_g
            h_new = o_g * jnp.tanh(c_new)
            return h_new, c_new

        # Fully unrolled wavefront: layer l's step t only waits on layer l-1's
        # step t and its own step t-1 -> critical path ~T+L instead of ~L*T.
        for t in range(T):
            inp = None
            for l in range(num_layers):
                if l == 0:
                    g = xg0[t * B:(t + 1) * B]
                else:
                    g = (jnp.dot(inp.astype(bf16), wih[l],
                                 preferred_element_type=f32) + bias[l])
                if t > 0:                                        # h == 0 at t == 0
                    g = g + jnp.dot(h[l].astype(bf16), whh[l],
                                    preferred_element_type=f32)
                h[l], c[l] = cell(g, c[l])
                inp = h[l]

        # ---- 3) FC head on the final layer's last hidden state + LayerNorm --
        y = jnp.dot(h[-1], w1_ref[...], preferred_element_type=f32) + b1_ref[...]
        y = jnp.maximum(y, 0.0)
        y = jnp.dot(y, w2_ref[...], preferred_element_type=f32) + b2_ref[...]
        y = jnp.maximum(y, 0.0)
        z = jnp.dot(y, w3_ref[...], preferred_element_type=f32) + b3_ref[...]

        mu = jnp.mean(z, axis=-1, keepdims=True)
        var = jnp.mean((z - mu) ** 2, axis=-1, keepdims=True)    # biased, eps=1e-5
        out_ref[...] = ((z - mu) * jax.lax.rsqrt(var + 1e-5)) * gamma_ref[...] + beta_ref[...]

    return kernel


# ----------------------------------------------------------------------------
# Wrapper: one pallas_call for the whole forward pass.
# ----------------------------------------------------------------------------
@jax.jit
def text_encoder_forward(text, params):
    B, T = text.shape
    emb = params["embedding"]                    # (V, E) f32, flat
    V, E = emb.shape
    lstm = params["lstm"]
    L = len(lstm)
    H = lstm[0]["whh_t"].shape[0]
    O = params["w3"].shape[1]

    # Time-major flat token ids: row r = t*B + b.
    tok = jnp.transpose(text).reshape(T * B, 1).astype(jnp.int32)

    kernel = make_fused_kernel(T=T, B=B, V=V, E=E, H=H, num_layers=L)
    vmem = pl.BlockSpec(memory_space=pltpu.MemorySpace.VMEM)

    lstm_args = []
    for layer in lstm:
        lstm_args += [layer["wih_t"], layer["whh_t"], layer["bias"]]

    n_in = 2 + 3 * L + 8
    return pl.pallas_call(
        kernel,
        out_shape=jax.ShapeDtypeStruct((B, O), jnp.float32),
        in_specs=[vmem] * n_in,
        out_specs=vmem,
    )(tok, emb, *lstm_args,
      params["w1"], params["b1"], params["w2"], params["b2"],
      params["w3"], params["b3"], params["ln_gamma"], params["ln_beta"])


# ----------------------------------------------------------------------------
# Parameter construction (PyTorch-layout "raw" weights) and kernel-layout prep.
# ----------------------------------------------------------------------------
def init_raw_params(key, vocab_size, embedding_dims, hidden_dims,
                    num_lstm_layers, fc_dims, out_dims):
    keys = iter(jax.random.split(key, 1 + 4 * num_lstm_layers + 6))

    def rnd(shape, scale=0.1):
        return (scale * jax.random.normal(next(keys), shape)).astype(jnp.float32)

    raw = {"embedding": rnd((vocab_size, embedding_dims))}
    lstm = []
    in_dim = embedding_dims
    for _ in range(num_lstm_layers):
        lstm.append({
            "w_ih": rnd((4 * hidden_dims, in_dim)),      # PyTorch layout, gates [i,f,g,o]
            "w_hh": rnd((4 * hidden_dims, hidden_dims)),
            "b_ih": rnd((4 * hidden_dims,)),
            "b_hh": rnd((4 * hidden_dims,)),
        })
        in_dim = hidden_dims
    raw["lstm"] = lstm
    raw["w1"] = rnd((hidden_dims, fc_dims)); raw["b1"] = rnd((fc_dims,))
    raw["w2"] = rnd((fc_dims, fc_dims));     raw["b2"] = rnd((fc_dims,))
    raw["w3"] = rnd((fc_dims, out_dims));    raw["b3"] = rnd((out_dims,))
    raw["ln_gamma"] = jnp.ones((out_dims,), jnp.float32)
    raw["ln_beta"] = jnp.zeros((out_dims,), jnp.float32)
    return raw


def _reorder_gates(w):
    # packed gate columns [i, f, g, o] -> [i, f, o, g] (one sigmoid slab, one tanh slab)
    i, f, g, o = jnp.split(w, 4, axis=-1)
    return jnp.concatenate([i, f, o, g], axis=-1)


def prep_params(raw):
    params = {"embedding": raw["embedding"]}     # flat (V, E): one tile, one DMA
    lstm = []
    for layer in raw["lstm"]:
        lstm.append({
            # bf16 matmul operands, f32 accumulation in-kernel
            "wih_t": _reorder_gates(jnp.transpose(layer["w_ih"])).astype(jnp.bfloat16),
            "whh_t": _reorder_gates(jnp.transpose(layer["w_hh"])).astype(jnp.bfloat16),
            "bias": _reorder_gates((layer["b_ih"] + layer["b_hh"]).reshape(1, -1)),
        })
    params["lstm"] = lstm
    params["w1"] = raw["w1"]; params["b1"] = raw["b1"].reshape(1, -1)
    params["w2"] = raw["w2"]; params["b2"] = raw["b2"].reshape(1, -1)
    params["w3"] = raw["w3"]; params["b3"] = raw["b3"].reshape(1, -1)
    params["ln_gamma"] = raw["ln_gamma"].reshape(1, -1)
    params["ln_beta"] = raw["ln_beta"].reshape(1, -1)
    return params


# ----------------------------------------------------------------------------
# Pure-JAX reference (standard PyTorch gate order, full f32) for correctness.
# ----------------------------------------------------------------------------
def reference_forward(text, raw):
    hp = jax.lax.Precision.HIGHEST
    x = jnp.take(raw["embedding"], text, axis=0)     # (B, T, E)
    B, T, _ = x.shape
    for layer in raw["lstm"]:
        H = layer["w_hh"].shape[1]
        h = jnp.zeros((B, H), jnp.float32)
        c = jnp.zeros((B, H), jnp.float32)
        bsum = layer["b_ih"] + layer["b_hh"]
        hs = []
        for t in range(T):
            g = (jnp.dot(x[:, t, :], layer["w_ih"].T, precision=hp)
                 + jnp.dot(h, layer["w_hh"].T, precision=hp) + bsum)
            i_g = jax.nn.sigmoid(g[:, 0 * H:1 * H])
            f_g = jax.nn.sigmoid(g[:, 1 * H:2 * H])
            g_g = jnp.tanh(g[:, 2 * H:3 * H])
            o_g = jax.nn.sigmoid(g[:, 3 * H:4 * H])
            c = f_g * c + i_g * g_g
            h = o_g * jnp.tanh(c)
            hs.append(h)
        x = jnp.stack(hs, axis=1)                    # (B, T, H)
    z = x[:, -1, :]
    z = jnp.maximum(jnp.dot(z, raw["w1"], precision=hp) + raw["b1"], 0.0)
    z = jnp.maximum(jnp.dot(z, raw["w2"], precision=hp) + raw["b2"], 0.0)
    z = jnp.dot(z, raw["w3"], precision=hp) + raw["b3"]
    mu = jnp.mean(z, axis=-1, keepdims=True)
    var = jnp.mean((z - mu) ** 2, axis=-1, keepdims=True)
    return (z - mu) * jax.lax.rsqrt(var + 1e-5) * raw["ln_gamma"] + raw["ln_beta"]


if __name__ == "__main__":
    vocab_size, embedding_dims, hidden_dims = 16, 32, 32
    num_lstm_layers, fc_dims, out_dims = 2, 32, 16
    batch, seq = 2, 8

    key = jax.random.PRNGKey(0)
    pkey, tkey = jax.random.split(key)
    raw = init_raw_params(pkey, vocab_size, embedding_dims, hidden_dims,
                          num_lstm_layers, fc_dims, out_dims)
    params = prep_params(raw)
    text = jax.random.randint(tkey, (batch, seq), 0, vocab_size, dtype=jnp.int32)

    out = text_encoder_forward(text, params)
    jax.block_until_ready(out)
    assert out.shape == (batch, out_dims)

    # Reference is full-f32 HIGHEST precision; kernel uses bf16 LSTM matmul
    # operands with f32 accumulation, so allow ~1% (output is LayerNorm'd, O(1)).
    ref = reference_forward(text, raw)
    assert bool(jnp.allclose(out, ref, atol=1e-2, rtol=1e-2)), (
        "max abs diff = %e" % float(jnp.max(jnp.abs(out - ref))))

    print("KERNEL_OK")
</pallas_src>

<mosaic_0001>
module attributes {stable_mosaic.version = 11 : i64} {
  func.func @kernel(%arg0: memref<16x1xi32, #tpu.memory_space<vmem>>, %arg1: memref<16x32xf32, #tpu.memory_space<vmem>>, %arg2: memref<32x128xbf16, #tpu.memory_space<vmem>>, %arg3: memref<32x128xbf16, #tpu.memory_space<vmem>>, %arg4: memref<1x128xf32, #tpu.memory_space<vmem>>, %arg5: memref<32x128xbf16, #tpu.memory_space<vmem>>, %arg6: memref<32x128xbf16, #tpu.memory_space<vmem>>, %arg7: memref<1x128xf32, #tpu.memory_space<vmem>>, %arg8: memref<32x32xf32, #tpu.memory_space<vmem>>, %arg9: memref<1x32xf32, #tpu.memory_space<vmem>>, %arg10: memref<32x32xf32, #tpu.memory_space<vmem>>, %arg11: memref<1x32xf32, #tpu.memory_space<vmem>>, %arg12: memref<32x16xf32, #tpu.memory_space<vmem>>, %arg13: memref<1x16xf32, #tpu.memory_space<vmem>>, %arg14: memref<1x16xf32, #tpu.memory_space<vmem>>, %arg15: memref<1x16xf32, #tpu.memory_space<vmem>>, %arg16: memref<2x16xf32, #tpu.memory_space<vmem>>) attributes {dimension_semantics = [], scalar_prefetch = 0 : i64, scratch_operands = 0 : i64, tpu.core_type = #tpu.core_type<tc>} {
    %c0 = arith.constant 0 : index
    %c0_0 = arith.constant 0 : index
    %0 = vector.load %arg0[%c0, %c0_0] : memref<16x1xi32, #tpu.memory_space<vmem>>, vector<16x1xi32>
    %1 = tpu.iota {dimensions = array<i32: 1>} : vector<16x16xi32>
    %2 = vector.broadcast %0 : vector<16x1xi32> to vector<16x16xi32>
    %3 = arith.cmpi eq, %1, %2 : vector<16x16xi32>
    %4 = arith.extui %3 : vector<16x16xi1> to vector<16x16xi32>
    %5 = arith.sitofp %4 : vector<16x16xi32> to vector<16x16xf32>
    %c0_1 = arith.constant 0 : index
    %c0_2 = arith.constant 0 : index
    %6 = vector.load %arg1[%c0_1, %c0_2] : memref<16x32xf32, #tpu.memory_space<vmem>>, vector<16x32xf32>
    %cst = arith.constant dense<0.000000e+00> : vector<16x32xf32>
    %7 = tpu.matmul %5, %6, %cst {dimension_numbers = #tpu.dot_dimension_numbers<[1], [0], [0], [1], [0, 0, 1, 1], [], []>} : vector<16x16xf32>, vector<16x32xf32>, vector<16x32xf32> -> vector<16x32xf32>
    %c0_3 = arith.constant 0 : index
    %c0_4 = arith.constant 0 : index
    %8 = vector.load %arg2[%c0_3, %c0_4] : memref<32x128xbf16, #tpu.memory_space<vmem>>, vector<32x128xbf16>
    %c0_5 = arith.constant 0 : index
    %c0_6 = arith.constant 0 : index
    %9 = vector.load %arg5[%c0_5, %c0_6] : memref<32x128xbf16, #tpu.memory_space<vmem>>, vector<32x128xbf16>
    %c0_7 = arith.constant 0 : index
    %c0_8 = arith.constant 0 : index
    %10 = vector.load %arg3[%c0_7, %c0_8] : memref<32x128xbf16, #tpu.memory_space<vmem>>, vector<32x128xbf16>
    %c0_9 = arith.constant 0 : index
    %c0_10 = arith.constant 0 : index
    %11 = vector.load %arg6[%c0_9, %c0_10] : memref<32x128xbf16, #tpu.memory_space<vmem>>, vector<32x128xbf16>
    %c0_11 = arith.constant 0 : index
    %c0_12 = arith.constant 0 : index
    %12 = vector.load %arg4[%c0_11, %c0_12] : memref<1x128xf32, #tpu.memory_space<vmem>>, vector<1x128xf32>
    %c0_13 = arith.constant 0 : index
    %c0_14 = arith.constant 0 : index
    %13 = vector.load %arg7[%c0_13, %c0_14] : memref<1x128xf32, #tpu.memory_space<vmem>>, vector<1x128xf32>
    %14 = arith.truncf %7 : vector<16x32xf32> to vector<16x32xbf16>
    %cst_15 = arith.constant dense<0.000000e+00> : vector<16x128xf32>
    %15 = tpu.matmul %14, %8, %cst_15 {dimension_numbers = #tpu.dot_dimension_numbers<[1], [0], [0], [1], [0, 0, 1, 1], [], []>} : vector<16x32xbf16>, vector<32x128xbf16>, vector<16x128xf32> -> vector<16x128xf32>
    %16 = vector.broadcast %12 : vector<1x128xf32> to vector<16x128xf32>
    %17 = arith.addf %15, %16 : vector<16x128xf32>
    %cst_16 = arith.constant 0.000000e+00 : f32
    %18 = vector.broadcast %cst_16 : f32 to vector<2x32xf32>
    %cst_17 = arith.constant 0.000000e+00 : f32
    %19 = vector.broadcast %cst_17 : f32 to vector<2x32xf32>
    %20 = vector.extract_strided_slice %17 {offsets = [0, 0], sizes = [2, 128], strides = [1, 1]} : vector<16x128xf32> to vector<2x128xf32>
    %21 = vector.extract_strided_slice %20 {offsets = [0, 0], sizes = [2, 96], strides = [1, 1]} : vector<2x128xf32> to vector<2x96xf32>
    %22 = arith.negf %21 : vector<2x96xf32>
    %23 = math.exp %22 : vector<2x96xf32>
    %cst_18 = arith.constant 1.000000e+00 : f32
    %24 = vector.broadcast %cst_18 : f32 to vector<2x96xf32>
    %25 = arith.addf %24, %23 : vector<2x96xf32>
    %26 = arith.divf %24, %25 : vector<2x96xf32>
    %27 = vector.extract_strided_slice %26 {offsets = [0, 0], sizes = [2, 32], strides = [1, 1]} : vector<2x96xf32> to vector<2x32xf32>
    %28 = vector.extract_strided_slice %26 {offsets = [0, 32], sizes = [2, 32], strides = [1, 1]} : vector<2x96xf32> to vector<2x32xf32>
    %29 = vector.extract_strided_slice %26 {offsets = [0, 64], sizes = [2, 32], strides = [1, 1]} : vector<2x96xf32> to vector<2x32xf32>
    %30 = vector.extract_strided_slice %20 {offsets = [0, 96], sizes = [2, 32], strides = [1, 1]} : vector<2x128xf32> to vector<2x32xf32>
    %31 = math.tanh %30 : vector<2x32xf32>
    %32 = arith.mulf %28, %18 : vector<2x32xf32>
    %33 = arith.mulf %27, %31 : vector<2x32xf32>
    %34 = arith.addf %32, %33 : vector<2x32xf32>
    %35 = math.tanh %34 : vector<2x32xf32>
    %36 = arith.mulf %29, %35 : vector<2x32xf32>
    %37 = arith.truncf %36 : vector<2x32xf32> to vector<2x32xbf16>
    %cst_19 = arith.constant dense<0.000000e+00> : vector<2x128xf32>
    %38 = tpu.matmul %37, %9, %cst_19 {dimension_numbers = #tpu.dot_dimension_numbers<[1], [0], [0], [1], [0, 0, 1, 1], [], []>} : vector<2x32xbf16>, vector<32x128xbf16>, vector<2x128xf32> -> vector<2x128xf32>
    %39 = vector.broadcast %13 : vector<1x128xf32> to vector<2x128xf32>
    %40 = arith.addf %38, %39 : vector<2x128xf32>
    %41 = vector.extract_strided_slice %40 {offsets = [0, 0], sizes = [2, 96], strides = [1, 1]} : vector<2x128xf32> to vector<2x96xf32>
    %42 = arith.negf %41 : vector<2x96xf32>
    %43 = math.exp %42 : vector<2x96xf32>
    %cst_20 = arith.constant 1.000000e+00 : f32
    %44 = vector.broadcast %cst_20 : f32 to vector<2x96xf32>
    %45 = arith.addf %44, %43 : vector<2x96xf32>
    %46 = arith.divf %44, %45 : vector<2x96xf32>
    %47 = vector.extract_strided_slice %46 {offsets = [0, 0], sizes = [2, 32], strides = [1, 1]} : vector<2x96xf32> to vector<2x32xf32>
    %48 = vector.extract_strided_slice %46 {offsets = [0, 32], sizes = [2, 32], strides = [1, 1]} : vector<2x96xf32> to vector<2x32xf32>
    %49 = vector.extract_strided_slice %46 {offsets = [0, 64], sizes = [2, 32], strides = [1, 1]} : vector<2x96xf32> to vector<2x32xf32>
    %50 = vector.extract_strided_slice %40 {offsets = [0, 96], sizes = [2, 32], strides = [1, 1]} : vector<2x128xf32> to vector<2x32xf32>
    %51 = math.tanh %50 : vector<2x32xf32>
    %52 = arith.mulf %48, %19 : vector<2x32xf32>
    %53 = arith.mulf %47, %51 : vector<2x32xf32>
    %54 = arith.addf %52, %53 : vector<2x32xf32>
    %55 = math.tanh %54 : vector<2x32xf32>
    %56 = arith.mulf %49, %55 : vector<2x32xf32>
    %57 = vector.extract_strided_slice %17 {offsets = [2, 0], sizes = [2, 128], strides = [1, 1]} : vector<16x128xf32> to vector<2x128xf32>
    %58 = arith.truncf %36 : vector<2x32xf32> to vector<2x32xbf16>
    %cst_21 = arith.constant dense<0.000000e+00> : vector<2x128xf32>
    %59 = tpu.matmul %58, %10, %cst_21 {dimension_numbers = #tpu.dot_dimension_numbers<[1], [0], [0], [1], [0, 0, 1, 1], [], []>} : vector<2x32xbf16>, vector<32x128xbf16>, vector<2x128xf32> -> vector<2x128xf32>
    %60 = arith.addf %57, %59 : vector<2x128xf32>
    %61 = vector.extract_strided_slice %60 {offsets = [0, 0], sizes = [2, 96], strides = [1, 1]} : vector<2x128xf32> to vector<2x96xf32>
    %62 = arith.negf %61 : vector<2x96xf32>
    %63 = math.exp %62 : vector<2x96xf32>
    %cst_22 = arith.constant 1.000000e+00 : f32
    %64 = vector.broadcast %cst_22 : f32 to vector<2x96xf32>
    %65 = arith.addf %64, %63 : vector<2x96xf32>
    %66 = arith.divf %64, %65 : vector<2x96xf32>
    %67 = vector.extract_strided_slice %66 {offsets = [0, 0], sizes = [2, 32], strides = [1, 1]} : vector<2x96xf32> to vector<2x32xf32>
    %68 = vector.extract_strided_slice %66 {offsets = [0, 32], sizes = [2, 32], strides = [1, 1]} : vector<2x96xf32> to vector<2x32xf32>
    %69 = vector.extract_strided_slice %66 {offsets = [0, 64], sizes = [2, 32], strides = [1, 1]} : vector<2x96xf32> to vector<2x32xf32>
    %70 = vector.extract_strided_slice %60 {offsets = [0, 96], sizes = [2, 32], strides = [1, 1]} : vector<2x128xf32> to vector<2x32xf32>
    %71 = math.tanh %70 : vector<2x32xf32>
    %72 = arith.mulf %68, %34 : vector<2x32xf32>
    %73 = arith.mulf %67, %71 : vector<2x32xf32>
    %74 = arith.addf %72, %73 : vector<2x32xf32>
    %75 = math.tanh %74 : vector<2x32xf32>
    %76 = arith.mulf %69, %75 : vector<2x32xf32>
    %77 = arith.truncf %76 : vector<2x32xf32> to vector<2x32xbf16>
    %cst_23 = arith.constant dense<0.000000e+00> : vector<2x128xf32>
    %78 = tpu.matmul %77, %9, %cst_23 {dimension_numbers = #tpu.dot_dimension_numbers<[1], [0], [0], [1], [0, 0, 1, 1], [], []>} : vector<2x32xbf16>, vector<32x128xbf16>, vector<2x128xf32> -> vector<2x128xf32>
    %79 = vector.broadcast %13 : vector<1x128xf32> to vector<2x128xf32>
    %80 = arith.addf %78, %79 : vector<2x128xf32>
    %81 = arith.truncf %56 : vector<2x32xf32> to vector<2x32xbf16>
    %cst_24 = arith.constant dense<0.000000e+00> : vector<2x128xf32>
    %82 = tpu.matmul %81, %11, %cst_24 {dimension_numbers = #tpu.dot_dimension_numbers<[1], [0], [0], [1], [0, 0, 1, 1], [], []>} : vector<2x32xbf16>, vector<32x128xbf16>, vector<2x128xf32> -> vector<2x128xf32>
    %83 = arith.addf %80, %82 : vector<2x128xf32>
    %84 = vector.extract_strided_slice %83 {offsets = [0, 0], sizes = [2, 96], strides = [1, 1]} : vector<2x128xf32> to vector<2x96xf32>
    %85 = arith.negf %84 : vector<2x96xf32>
    %86 = math.exp %85 : vector<2x96xf32>
    %cst_25 = arith.constant 1.000000e+00 : f32
    %87 = vector.broadcast %cst_25 : f32 to vector<2x96xf32>
    %88 = arith.addf %87, %86 : vector<2x96xf32>
    %89 = arith.divf %87, %88 : vector<2x96xf32>
    %90 = vector.extract_strided_slice %89 {offsets = [0, 0], sizes = [2, 32], strides = [1, 1]} : vector<2x96xf32> to vector<2x32xf32>
    %91 = vector.extract_strided_slice %89 {offsets = [0, 32], sizes = [2, 32], strides = [1, 1]} : vector<2x96xf32> to vector<2x32xf32>
    %92 = vector.extract_strided_slice %89 {offsets = [0, 64], sizes = [2, 32], strides = [1, 1]} : vector<2x96xf32> to vector<2x32xf32>
    %93 = vector.extract_strided_slice %83 {offsets = [0, 96], sizes = [2, 32], strides = [1, 1]} : vector<2x128xf32> to vector<2x32xf32>
    %94 = math.tanh %93 : vector<2x32xf32>
    %95 = arith.mulf %91, %54 : vector<2x32xf32>
    %96 = arith.mulf %90, %94 : vector<2x32xf32>
    %97 = arith.addf %95, %96 : vector<2x32xf32>
    %98 = math.tanh %97 : vector<2x32xf32>
    %99 = arith.mulf %92, %98 : vector<2x32xf32>
    %100 = vector.extract_strided_slice %17 {offsets = [4, 0], sizes = [2, 128], strides = [1, 1]} : vector<16x128xf32> to vector<2x128xf32>
    %101 = arith.truncf %76 : vector<2x32xf32> to vector<2x32xbf16>
    %cst_26 = arith.constant dense<0.000000e+00> : vector<2x128xf32>
    %102 = tpu.matmul %101, %10, %cst_26 {dimension_numbers = #tpu.dot_dimension_numbers<[1], [0], [0], [1], [0, 0, 1, 1], [], []>} : vector<2x32xbf16>, vector<32x128xbf16>, vector<2x128xf32> -> vector<2x128xf32>
    %103 = arith.addf %100, %102 : vector<2x128xf32>
    %104 = vector.extract_strided_slice %103 {offsets = [0, 0], sizes = [2, 96], strides = [1, 1]} : vector<2x128xf32> to vector<2x96xf32>
    %105 = arith.negf %104 : vector<2x96xf32>
    %106 = math.exp %105 : vector<2x96xf32>
    %cst_27 = arith.constant 1.000000e+00 : f32
    %107 = vector.broadcast %cst_27 : f32 to vector<2x96xf32>
    %108 = arith.addf %107, %106 : vector<2x96xf32>
    %109 = arith.divf %107, %108 : vector<2x96xf32>
    %110 = vector.extract_strided_slice %109 {offsets = [0, 0], sizes = [2, 32], strides = [1, 1]} : vector<2x96xf32> to vector<2x32xf32>
    %111 = vector.extract_strided_slice %109 {offsets = [0, 32], sizes = [2, 32], strides = [1, 1]} : vector<2x96xf32> to vector<2x32xf32>
    %112 = vector.extract_strided_slice %109 {offsets = [0, 64], sizes = [2, 32], strides = [1, 1]} : vector<2x96xf32> to vector<2x32xf32>
    %113 = vector.extract_strided_slice %103 {offsets = [0, 96], sizes = [2, 32], strides = [1, 1]} : vector<2x128xf32> to vector<2x32xf32>
    %114 = math.tanh %113 : vector<2x32xf32>
    %115 = arith.mulf %111, %74 : vector<2x32xf32>
    %116 = arith.mulf %110, %114 : vector<2x32xf32>
    %117 = arith.addf %115, %116 : vector<2x32xf32>
    %118 = math.tanh %117 : vector<2x32xf32>
    %119 = arith.mulf %112, %118 : vector<2x32xf32>
    %120 = arith.truncf %119 : vector<2x32xf32> to vector<2x32xbf16>
    %cst_28 = arith.constant dense<0.000000e+00> : vector<2x128xf32>
    %121 = tpu.matmul %120, %9, %cst_28 {dimension_numbers = #tpu.dot_dimension_numbers<[1], [0], [0], [1], [0, 0, 1, 1], [], []>} : vector<2x32xbf16>, vector<32x128xbf16>, vector<2x128xf32> -> vector<2x128xf32>
    %122 = vector.broadcast %13 : vector<1x128xf32> to vector<2x128xf32>
    %123 = arith.addf %121, %122 : vector<2x128xf32>
    %124 = arith.truncf %99 : vector<2x32xf32> to vector<2x32xbf16>
    %cst_29 = arith.constant dense<0.000000e+00> : vector<2x128xf32>
    %125 = tpu.matmul %124, %11, %cst_29 {dimension_numbers = #tpu.dot_dimension_numbers<[1], [0], [0], [1], [0, 0, 1, 1], [], []>} : vector<2x32xbf16>, vector<32x128xbf16>, vector<2x128xf32> -> vector<2x128xf32>
    %126 = arith.addf %123, %125 : vector<2x128xf32>
    %127 = vector.extract_strided_slice %126 {offsets = [0, 0], sizes = [2, 96], strides = [1, 1]} : vector<2x128xf32> to vector<2x96xf32>
    %128 = arith.negf %127 : vector<2x96xf32>
    %129 = math.exp %128 : vector<2x96xf32>
    %cst_30 = arith.constant 1.000000e+00 : f32
    %130 = vector.broadcast %cst_30 : f32 to vector<2x96xf32>
    %131 = arith.addf %130, %129 : vector<2x96xf32>
    %132 = arith.divf %130, %131 : vector<2x96xf32>
    %133 = vector.extract_strided_slice %132 {offsets = [0, 0], sizes = [2, 32], strides = [1, 1]} : vector<2x96xf32> to vector<2x32xf32>
    %134 = vector.extract_strided_slice %132 {offsets = [0, 32], sizes = [2, 32], strides = [1, 1]} : vector<2x96xf32> to vector<2x32xf32>
    %135 = vector.extract_strided_slice %132 {offsets = [0, 64], sizes = [2, 32], strides = [1, 1]} : vector<2x96xf32> to vector<2x32xf32>
    %136 = vector.extract_strided_slice %126 {offsets = [0, 96], sizes = [2, 32], strides = [1, 1]} : vector<2x128xf32> to vector<2x32xf32>
    %137 = math.tanh %136 : vector<2x32xf32>
    %138 = arith.mulf %134, %97 : vector<2x32xf32>
    %139 = arith.mulf %133, %137 : vector<2x32xf32>
    %140 = arith.addf %138, %139 : vector<2x32xf32>
    %141 = math.tanh %140 : vector<2x32xf32>
    %142 = arith.mulf %135, %141 : vector<2x32xf32>
    %143 = vector.extract_strided_slice %17 {offsets = [6, 0], sizes = [2, 128], strides = [1, 1]} : vector<16x128xf32> to vector<2x128xf32>
    %144 = arith.truncf %119 : vector<2x32xf32> to vector<2x32xbf16>
    %cst_31 = arith.constant dense<0.000000e+00> : vector<2x128xf32>
    %145 = tpu.matmul %144, %10, %cst_31 {dimension_numbers = #tpu.dot_dimension_numbers<[1], [0], [0], [1], [0, 0, 1, 1], [], []>} : vector<2x32xbf16>, vector<32x128xbf16>, vector<2x128xf32> -> vector<2x128xf32>
    %146 = arith.addf %143, %145 : vector<2x128xf32>
    %147 = vector.extract_strided_slice %146 {offsets = [0, 0], sizes = [2, 96], strides = [1, 1]} : vector<2x128xf32> to vector<2x96xf32>
    %148 = arith.negf %147 : vector<2x96xf32>
    %149 = math.exp %148 : vector<2x96xf32>
    %cst_32 = arith.constant 1.000000e+00 : f32
    %150 = vector.broadcast %cst_32 : f32 to vector<2x96xf32>
    %151 = arith.addf %150, %149 : vector<2x96xf32>
    %152 = arith.divf %150, %151 : vector<2x96xf32>
    %153 = vector.extract_strided_slice %152 {offsets = [0, 0], sizes = [2, 32], strides = [1, 1]} : vector<2x96xf32> to vector<2x32xf32>
    %154 = vector.extract_strided_slice %152 {offsets = [0, 32], sizes = [2, 32], strides = [1, 1]} : vector<2x96xf32> to vector<2x32xf32>
    %155 = vector.extract_strided_slice %152 {offsets = [0, 64], sizes = [2, 32], strides = [1, 1]} : vector<2x96xf32> to vector<2x32xf32>
    %156 = vector.extract_strided_slice %146 {offsets = [0, 96], sizes = [2, 32], strides = [1, 1]} : vector<2x128xf32> to vector<2x32xf32>
    %157 = math.tanh %156 : vector<2x32xf32>
    %158 = arith.mulf %154, %117 : vector<2x32xf32>
    %159 = arith.mulf %153, %157 : vector<2x32xf32>
    %160 = arith.addf %158, %159 : vector<2x32xf32>
    %161 = math.tanh %160 : vector<2x32xf32>
    %162 = arith.mulf %155, %161 : vector<2x32xf32>
    %163 = arith.truncf %162 : vector<2x32xf32> to vector<2x32xbf16>
    %cst_33 = arith.constant dense<0.000000e+00> : vector<2x128xf32>
    %164 = tpu.matmul %163, %9, %cst_33 {dimension_numbers = #tpu.dot_dimension_numbers<[1], [0], [0], [1], [0, 0, 1, 1], [], []>} : vector<2x32xbf16>, vector<32x128xbf16>, vector<2x128xf32> -> vector<2x128xf32>
    %165 = vector.broadcast %13 : vector<1x128xf32> to vector<2x128xf32>
    %166 = arith.addf %164, %165 : vector<2x128xf32>
    %167 = arith.truncf %142 : vector<2x32xf32> to vector<2x32xbf16>
    %cst_34 = arith.constant dense<0.000000e+00> : vector<2x128xf32>
    %168 = tpu.matmul %167, %11, %cst_34 {dimension_numbers = #tpu.dot_dimension_numbers<[1], [0], [0], [1], [0, 0, 1, 1], [], []>} : vector<2x32xbf16>, vector<32x128xbf16>, vector<2x128xf32> -> vector<2x128xf32>
    %169 = arith.addf %166, %168 : vector<2x128xf32>
    %170 = vector.extract_strided_slice %169 {offsets = [0, 0], sizes = [2, 96], strides = [1, 1]} : vector<2x128xf32> to vector<2x96xf32>
    %171 = arith.negf %170 : vector<2x96xf32>
    %172 = math.exp %171 : vector<2x96xf32>
    %cst_35 = arith.constant 1.000000e+00 : f32
    %173 = vector.broadcast %cst_35 : f32 to vector<2x96xf32>
    %174 = arith.addf %173, %172 : vector<2x96xf32>
    %175 = arith.divf %173, %174 : vector<2x96xf32>
    %176 = vector.extract_strided_slice %175 {offsets = [0, 0], sizes = [2, 32], strides = [1, 1]} : vector<2x96xf32> to vector<2x32xf32>
    %177 = vector.extract_strided_slice %175 {offsets = [0, 32], sizes = [2, 32], strides = [1, 1]} : vector<2x96xf32> to vector<2x32xf32>
    %178 = vector.extract_strided_slice %175 {offsets = [0, 64], sizes = [2, 32], strides = [1, 1]} : vector<2x96xf32> to vector<2x32xf32>
    %179 = vector.extract_strided_slice %169 {offsets = [0, 96], sizes = [2, 32], strides = [1, 1]} : vector<2x128xf32> to vector<2x32xf32>
    %180 = math.tanh %179 : vector<2x32xf32>
    %181 = arith.mulf %177, %140 : vector<2x32xf32>
    %182 = arith.mulf %176, %180 : vector<2x32xf32>
    %183 = arith.addf %181, %182 : vector<2x32xf32>
    %184 = math.tanh %183 : vector<2x32xf32>
    %185 = arith.mulf %178, %184 : vector<2x32xf32>
    %186 = vector.extract_strided_slice %17 {offsets = [8, 0], sizes = [2, 128], strides = [1, 1]} : vector<16x128xf32> to vector<2x128xf32>
    %187 = arith.truncf %162 : vector<2x32xf32> to vector<2x32xbf16>
    %cst_36 = arith.constant dense<0.000000e+00> : vector<2x128xf32>
    %188 = tpu.matmul %187, %10, %cst_36 {dimension_numbers = #tpu.dot_dimension_numbers<[1], [0], [0], [1], [0, 0, 1, 1], [], []>} : vector<2x32xbf16>, vector<32x128xbf16>, vector<2x128xf32> -> vector<2x128xf32>
    %189 = arith.addf %186, %188 : vector<2x128xf32>
    %190 = vector.extract_strided_slice %189 {offsets = [0, 0], sizes = [2, 96], strides = [1, 1]} : vector<2x128xf32> to vector<2x96xf32>
    %191 = arith.negf %190 : vector<2x96xf32>
    %192 = math.exp %191 : vector<2x96xf32>
    %cst_37 = arith.constant 1.000000e+00 : f32
    %193 = vector.broadcast %cst_37 : f32 to vector<2x96xf32>
    %194 = arith.addf %193, %192 : vector<2x96xf32>
    %195 = arith.divf %193, %194 : vector<2x96xf32>
    %196 = vector.extract_strided_slice %195 {offsets = [0, 0], sizes = [2, 32], strides = [1, 1]} : vector<2x96xf32> to vector<2x32xf32>
    %197 = vector.extract_strided_slice %195 {offsets = [0, 32], sizes = [2, 32], strides = [1, 1]} : vector<2x96xf32> to vector<2x32xf32>
    %198 = vector.extract_strided_slice %195 {offsets = [0, 64], sizes = [2, 32], strides = [1, 1]} : vector<2x96xf32> to vector<2x32xf32>
    %199 = vector.extract_strided_slice %189 {offsets = [0, 96], sizes = [2, 32], strides = [1, 1]} : vector<2x128xf32> to vector<2x32xf32>
    %200 = math.tanh %199 : vector<2x32xf32>
    %201 = arith.mulf %197, %160 : vector<2x32xf32>
    %202 = arith.mulf %196, %200 : vector<2x32xf32>
    %203 = arith.addf %201, %202 : vector<2x32xf32>
    %204 = math.tanh %203 : vector<2x32xf32>
    %205 = arith.mulf %198, %204 : vector<2x32xf32>
    %206 = arith.truncf %205 : vector<2x32xf32> to vector<2x32xbf16>
    %cst_38 = arith.constant dense<0.000000e+00> : vector<2x128xf32>
    %207 = tpu.matmul %206, %9, %cst_38 {dimension_numbers = #tpu.dot_dimension_numbers<[1], [0], [0], [1], [0, 0, 1, 1], [], []>} : vector<2x32xbf16>, vector<32x128xbf16>, vector<2x128xf32> -> vector<2x128xf32>
    %208 = vector.broadcast %13 : vector<1x128xf32> to vector<2x128xf32>
    %209 = arith.addf %207, %208 : vector<2x128xf32>
    %210 = arith.truncf %185 : vector<2x32xf32> to vector<2x32xbf16>
    %cst_39 = arith.constant dense<0.000000e+00> : vector<2x128xf32>
    %211 = tpu.matmul %210, %11, %cst_39 {dimension_numbers = #tpu.dot_dimension_numbers<[1], [0], [0], [1], [0, 0, 1, 1], [], []>} : vector<2x32xbf16>, vector<32x128xbf16>, vector<2x128xf32> -> vector<2x128xf32>
    %212 = arith.addf %209, %211 : vector<2x128xf32>
    %213 = vector.extract_strided_slice %212 {offsets = [0, 0], sizes = [2, 96], strides = [1, 1]} : vector<2x128xf32> to vector<2x96xf32>
    %214 = arith.negf %213 : vector<2x96xf32>
    %215 = math.exp %214 : vector<2x96xf32>
    %cst_40 = arith.constant 1.000000e+00 : f32
    %216 = vector.broadcast %cst_40 : f32 to vector<2x96xf32>
    %217 = arith.addf %216, %215 : vector<2x96xf32>
    %218 = arith.divf %216, %217 : vector<2x96xf32>
    %219 = vector.extract_strided_slice %218 {offsets = [0, 0], sizes = [2, 32], strides = [1, 1]} : vector<2x96xf32> to vector<2x32xf32>
    %220 = vector.extract_strided_slice %218 {offsets = [0, 32], sizes = [2, 32], strides = [1, 1]} : vector<2x96xf32> to vector<2x32xf32>
    %221 = vector.extract_strided_slice %218 {offsets = [0, 64], sizes = [2, 32], strides = [1, 1]} : vector<2x96xf32> to vector<2x32xf32>
    %222 = vector.extract_strided_slice %212 {offsets = [0, 96], sizes = [2, 32], strides = [1, 1]} : vector<2x128xf32> to vector<2x32xf32>
    %223 = math.tanh %222 : vector<2x32xf32>
    %224 = arith.mulf %220, %183 : vector<2x32xf32>
    %225 = arith.mulf %219, %223 : vector<2x32xf32>
    %226 = arith.addf %224, %225 : vector<2x32xf32>
    %227 = math.tanh %226 : vector<2x32xf32>
    %228 = arith.mulf %221, %227 : vector<2x32xf32>
    %229 = vector.extract_strided_slice %17 {offsets = [10, 0], sizes = [2, 128], strides = [1, 1]} : vector<16x128xf32> to vector<2x128xf32>
    %230 = arith.truncf %205 : vector<2x32xf32> to vector<2x32xbf16>
    %cst_41 = arith.constant dense<0.000000e+00> : vector<2x128xf32>
    %231 = tpu.matmul %230, %10, %cst_41 {dimension_numbers = #tpu.dot_dimension_numbers<[1], [0], [0], [1], [0, 0, 1, 1], [], []>} : vector<2x32xbf16>, vector<32x128xbf16>, vector<2x128xf32> -> vector<2x128xf32>
    %232 = arith.addf %229, %231 : vector<2x128xf32>
    %233 = vector.extract_strided_slice %232 {offsets = [0, 0], sizes = [2, 96], strides = [1, 1]} : vector<2x128xf32> to vector<2x96xf32>
    %234 = arith.negf %233 : vector<2x96xf32>
    %235 = math.exp %234 : vector<2x96xf32>
    %cst_42 = arith.constant 1.000000e+00 : f32
    %236 = vector.broadcast %cst_42 : f32 to vector<2x96xf32>
    %237 = arith.addf %236, %235 : vector<2x96xf32>
    %238 = arith.divf %236, %237 : vector<2x96xf32>
    %239 = vector.extract_strided_slice %238 {offsets = [0, 0], sizes = [2, 32], strides = [1, 1]} : vector<2x96xf32> to vector<2x32xf32>
    %240 = vector.extract_strided_slice %238 {offsets = [0, 32], sizes = [2, 32], strides = [1, 1]} : vector<2x96xf32> to vector<2x32xf32>
    %241 = vector.extract_strided_slice %238 {offsets = [0, 64], sizes = [2, 32], strides = [1, 1]} : vector<2x96xf32> to vector<2x32xf32>
    %242 = vector.extract_strided_slice %232 {offsets = [0, 96], sizes = [2, 32], strides = [1, 1]} : vector<2x128xf32> to vector<2x32xf32>
    %243 = math.tanh %242 : vector<2x32xf32>
    %244 = arith.mulf %240, %203 : vector<2x32xf32>
    %245 = arith.mulf %239, %243 : vector<2x32xf32>
    %246 = arith.addf %244, %245 : vector<2x32xf32>
    %247 = math.tanh %246 : vector<2x32xf32>
    %248 = arith.mulf %241, %247 : vector<2x32xf32>
    %249 = arith.truncf %248 : vector<2x32xf32> to vector<2x32xbf16>
    %cst_43 = arith.constant dense<0.000000e+00> : vector<2x128xf32>
    %250 = tpu.matmul %249, %9, %cst_43 {dimension_numbers = #tpu.dot_dimension_numbers<[1], [0], [0], [1], [0, 0, 1, 1], [], []>} : vector<2x32xbf16>, vector<32x128xbf16>, vector<2x128xf32> -> vector<2x128xf32>
    %251 = vector.broadcast %13 : vector<1x128xf32> to vector<2x128xf32>
    %252 = arith.addf %250, %251 : vector<2x128xf32>
    %253 = arith.truncf %228 : vector<2x32xf32> to vector<2x32xbf16>
    %cst_44 = arith.constant dense<0.000000e+00> : vector<2x128xf32>
    %254 = tpu.matmul %253, %11, %cst_44 {dimension_numbers = #tpu.dot_dimension_numbers<[1], [0], [0], [1], [0, 0, 1, 1], [], []>} : vector<2x32xbf16>, vector<32x128xbf16>, vector<2x128xf32> -> vector<2x128xf32>
    %255 = arith.addf %252, %254 : vector<2x128xf32>
    %256 = vector.extract_strided_slice %255 {offsets = [0, 0], sizes = [2, 96], strides = [1, 1]} : vector<2x128xf32> to vector<2x96xf32>
    %257 = arith.negf %256 : vector<2x96xf32>
    %258 = math.exp %257 : vector<2x96xf32>
    %cst_45 = arith.constant 1.000000e+00 : f32
    %259 = vector.broadcast %cst_45 : f32 to vector<2x96xf32>
    %260 = arith.addf %259, %258 : vector<2x96xf32>
    %261 = arith.divf %259, %260 : vector<2x96xf32>
    %262 = vector.extract_strided_slice %261 {offsets = [0, 0], sizes = [2, 32], strides = [1, 1]} : vector<2x96xf32> to vector<2x32xf32>
    %263 = vector.extract_strided_slice %261 {offsets = [0, 32], sizes = [2, 32], strides = [1, 1]} : vector<2x96xf32> to vector<2x32xf32>
    %264 = vector.extract_strided_slice %261 {offsets = [0, 64], sizes = [2, 32], strides = [1, 1]} : vector<2x96xf32> to vector<2x32xf32>
    %265 = vector.extract_strided_slice %255 {offsets = [0, 96], sizes = [2, 32], strides = [1, 1]} : vector<2x128xf32> to vector<2x32xf32>
    %266 = math.tanh %265 : vector<2x32xf32>
    %267 = arith.mulf %263, %226 : vector<2x32xf32>
    %268 = arith.mulf %262, %266 : vector<2x32xf32>
    %269 = arith.addf %267, %268 : vector<2x32xf32>
    %270 = math.tanh %269 : vector<2x32xf32>
    %271 = arith.mulf %264, %270 : vector<2x32xf32>
    %272 = vector.extract_strided_slice %17 {offsets = [12, 0], sizes = [2, 128], strides = [1, 1]} : vector<16x128xf32> to vector<2x128xf32>
    %273 = arith.truncf %248 : vector<2x32xf32> to vector<2x32xbf16>
    %cst_46 = arith.constant dense<0.000000e+00> : vector<2x128xf32>
    %274 = tpu.matmul %273, %10, %cst_46 {dimension_numbers = #tpu.dot_dimension_numbers<[1], [0], [0], [1], [0, 0, 1, 1], [], []>} : vector<2x32xbf16>, vector<32x128xbf16>, vector<2x128xf32> -> vector<2x128xf32>
    %275 = arith.addf %272, %274 : vector<2x128xf32>
    %276 = vector.extract_strided_slice %275 {offsets = [0, 0], sizes = [2, 96], strides = [1, 1]} : vector<2x128xf32> to vector<2x96xf32>
    %277 = arith.negf %276 : vector<2x96xf32>
    %278 = math.exp %277 : vector<2x96xf32>
    %cst_47 = arith.constant 1.000000e+00 : f32
    %279 = vector.broadcast %cst_47 : f32 to vector<2x96xf32>
    %280 = arith.addf %279, %278 : vector<2x96xf32>
    %281 = arith.divf %279, %280 : vector<2x96xf32>
    %282 = vector.extract_strided_slice %281 {offsets = [0, 0], sizes = [2, 32], strides = [1, 1]} : vector<2x96xf32> to vector<2x32xf32>
    %283 = vector.extract_strided_slice %281 {offsets = [0, 32], sizes = [2, 32], strides = [1, 1]} : vector<2x96xf32> to vector<2x32xf32>
    %284 = vector.extract_strided_slice %281 {offsets = [0, 64], sizes = [2, 32], strides = [1, 1]} : vector<2x96xf32> to vector<2x32xf32>
    %285 = vector.extract_strided_slice %275 {offsets = [0, 96], sizes = [2, 32], strides = [1, 1]} : vector<2x128xf32> to vector<2x32xf32>
    %286 = math.tanh %285 : vector<2x32xf32>
    %287 = arith.mulf %283, %246 : vector<2x32xf32>
    %288 = arith.mulf %282, %286 : vector<2x32xf32>
    %289 = arith.addf %287, %288 : vector<2x32xf32>
    %290 = math.tanh %289 : vector<2x32xf32>
    %291 = arith.mulf %284, %290 : vector<2x32xf32>
    %292 = arith.truncf %291 : vector<2x32xf32> to vector<2x32xbf16>
    %cst_48 = arith.constant dense<0.000000e+00> : vector<2x128xf32>
    %293 = tpu.matmul %292, %9, %cst_48 {dimension_numbers = #tpu.dot_dimension_numbers<[1], [0], [0], [1], [0, 0, 1, 1], [], []>} : vector<2x32xbf16>, vector<32x128xbf16>, vector<2x128xf32> -> vector<2x128xf32>
    %294 = vector.broadcast %13 : vector<1x128xf32> to vector<2x128xf32>
    %295 = arith.addf %293, %294 : vector<2x128xf32>
    %296 = arith.truncf %271 : vector<2x32xf32> to vector<2x32xbf16>
    %cst_49 = arith.constant dense<0.000000e+00> : vector<2x128xf32>
    %297 = tpu.matmul %296, %11, %cst_49 {dimension_numbers = #tpu.dot_dimension_numbers<[1], [0], [0], [1], [0, 0, 1, 1], [], []>} : vector<2x32xbf16>, vector<32x128xbf16>, vector<2x128xf32> -> vector<2x128xf32>
    %298 = arith.addf %295, %297 : vector<2x128xf32>
    %299 = vector.extract_strided_slice %298 {offsets = [0, 0], sizes = [2, 96], strides = [1, 1]} : vector<2x128xf32> to vector<2x96xf32>
    %300 = arith.negf %299 : vector<2x96xf32>
    %301 = math.exp %300 : vector<2x96xf32>
    %cst_50 = arith.constant 1.000000e+00 : f32
    %302 = vector.broadcast %cst_50 : f32 to vector<2x96xf32>
    %303 = arith.addf %302, %301 : vector<2x96xf32>
    %304 = arith.divf %302, %303 : vector<2x96xf32>
    %305 = vector.extract_strided_slice %304 {offsets = [0, 0], sizes = [2, 32], strides = [1, 1]} : vector<2x96xf32> to vector<2x32xf32>
    %306 = vector.extract_strided_slice %304 {offsets = [0, 32], sizes = [2, 32], strides = [1, 1]} : vector<2x96xf32> to vector<2x32xf32>
    %307 = vector.extract_strided_slice %304 {offsets = [0, 64], sizes = [2, 32], strides = [1, 1]} : vector<2x96xf32> to vector<2x32xf32>
    %308 = vector.extract_strided_slice %298 {offsets = [0, 96], sizes = [2, 32], strides = [1, 1]} : vector<2x128xf32> to vector<2x32xf32>
    %309 = math.tanh %308 : vector<2x32xf32>
    %310 = arith.mulf %306, %269 : vector<2x32xf32>
    %311 = arith.mulf %305, %309 : vector<2x32xf32>
    %312 = arith.addf %310, %311 : vector<2x32xf32>
    %313 = math.tanh %312 : vector<2x32xf32>
    %314 = arith.mulf %307, %313 : vector<2x32xf32>
    %315 = vector.extract_strided_slice %17 {offsets = [14, 0], sizes = [2, 128], strides = [1, 1]} : vector<16x128xf32> to vector<2x128xf32>
    %316 = arith.truncf %291 : vector<2x32xf32> to vector<2x32xbf16>
    %cst_51 = arith.constant dense<0.000000e+00> : vector<2x128xf32>
    %317 = tpu.matmul %316, %10, %cst_51 {dimension_numbers = #tpu.dot_dimension_numbers<[1], [0], [0], [1], [0, 0, 1, 1], [], []>} : vector<2x32xbf16>, vector<32x128xbf16>, vector<2x128xf32> -> vector<2x128xf32>
    %318 = arith.addf %315, %317 : vector<2x128xf32>
    %319 = vector.extract_strided_slice %318 {offsets = [0, 0], sizes = [2, 96], strides = [1, 1]} : vector<2x128xf32> to vector<2x96xf32>
    %320 = arith.negf %319 : vector<2x96xf32>
    %321 = math.exp %320 : vector<2x96xf32>
    %cst_52 = arith.constant 1.000000e+00 : f32
    %322 = vector.broadcast %cst_52 : f32 to vector<2x96xf32>
    %323 = arith.addf %322, %321 : vector<2x96xf32>
    %324 = arith.divf %322, %323 : vector<2x96xf32>
    %325 = vector.extract_strided_slice %324 {offsets = [0, 0], sizes = [2, 32], strides = [1, 1]} : vector<2x96xf32> to vector<2x32xf32>
    %326 = vector.extract_strided_slice %324 {offsets = [0, 32], sizes = [2, 32], strides = [1, 1]} : vector<2x96xf32> to vector<2x32xf32>
    %327 = vector.extract_strided_slice %324 {offsets = [0, 64], sizes = [2, 32], strides = [1, 1]} : vector<2x96xf32> to vector<2x32xf32>
    %328 = vector.extract_strided_slice %318 {offsets = [0, 96], sizes = [2, 32], strides = [1, 1]} : vector<2x128xf32> to vector<2x32xf32>
    %329 = math.tanh %328 : vector<2x32xf32>
    %330 = arith.mulf %326, %289 : vector<2x32xf32>
    %331 = arith.mulf %325, %329 : vector<2x32xf32>
    %332 = arith.addf %330, %331 : vector<2x32xf32>
    %333 = math.tanh %332 : vector<2x32xf32>
    %334 = arith.mulf %327, %333 : vector<2x32xf32>
    %335 = arith.truncf %334 : vector<2x32xf32> to vector<2x32xbf16>
    %cst_53 = arith.constant dense<0.000000e+00> : vector<2x128xf32>
    %336 = tpu.matmul %335, %9, %cst_53 {dimension_numbers = #tpu.dot_dimension_numbers<[1], [0], [0], [1], [0, 0, 1, 1], [], []>} : vector<2x32xbf16>, vector<32x128xbf16>, vector<2x128xf32> -> vector<2x128xf32>
    %337 = vector.broadcast %13 : vector<1x128xf32> to vector<2x128xf32>
    %338 = arith.addf %336, %337 : vector<2x128xf32>
    %339 = arith.truncf %314 : vector<2x32xf32> to vector<2x32xbf16>
    %cst_54 = arith.constant dense<0.000000e+00> : vector<2x128xf32>
    %340 = tpu.matmul %339, %11, %cst_54 {dimension_numbers = #tpu.dot_dimension_numbers<[1], [0], [0], [1], [0, 0, 1, 1], [], []>} : vector<2x32xbf16>, vector<32x128xbf16>, vector<2x128xf32> -> vector<2x128xf32>
    %341 = arith.addf %338, %340 : vector<2x128xf32>
    %342 = vector.extract_strided_slice %341 {offsets = [0, 0], sizes = [2, 96], strides = [1, 1]} : vector<2x128xf32> to vector<2x96xf32>
    %343 = arith.negf %342 : vector<2x96xf32>
    %344 = math.exp %343 : vector<2x96xf32>
    %cst_55 = arith.constant 1.000000e+00 : f32
    %345 = vector.broadcast %cst_55 : f32 to vector<2x96xf32>
    %346 = arith.addf %345, %344 : vector<2x96xf32>
    %347 = arith.divf %345, %346 : vector<2x96xf32>
    %348 = vector.extract_strided_slice %347 {offsets = [0, 0], sizes = [2, 32], strides = [1, 1]} : vector<2x96xf32> to vector<2x32xf32>
    %349 = vector.extract_strided_slice %347 {offsets = [0, 32], sizes = [2, 32], strides = [1, 1]} : vector<2x96xf32> to vector<2x32xf32>
    %350 = vector.extract_strided_slice %347 {offsets = [0, 64], sizes = [2, 32], strides = [1, 1]} : vector<2x96xf32> to vector<2x32xf32>
    %351 = vector.extract_strided_slice %341 {offsets = [0, 96], sizes = [2, 32], strides = [1, 1]} : vector<2x128xf32> to vector<2x32xf32>
    %352 = math.tanh %351 : vector<2x32xf32>
    %353 = arith.mulf %349, %312 : vector<2x32xf32>
    %354 = arith.mulf %348, %352 : vector<2x32xf32>
    %355 = arith.addf %353, %354 : vector<2x32xf32>
    %356 = math.tanh %355 : vector<2x32xf32>
    %357 = arith.mulf %350, %356 : vector<2x32xf32>
    %c0_56 = arith.constant 0 : index
    %c0_57 = arith.constant 0 : index
    %358 = vector.load %arg8[%c0_56, %c0_57] : memref<32x32xf32, #tpu.memory_space<vmem>>, vector<32x32xf32>
    %cst_58 = arith.constant dense<0.000000e+00> : vector<2x32xf32>
    %359 = tpu.matmul %357, %358, %cst_58 {dimension_numbers = #tpu.dot_dimension_numbers<[1], [0], [0], [1], [0, 0, 1, 1], [], []>} : vector<2x32xf32>, vector<32x32xf32>, vector<2x32xf32> -> vector<2x32xf32>
    %c0_59 = arith.constant 0 : index
    %c0_60 = arith.constant 0 : index
    %360 = vector.load %arg9[%c0_59, %c0_60] : memref<1x32xf32, #tpu.memory_space<vmem>>, vector<1x32xf32>
    %361 = vector.broadcast %360 : vector<1x32xf32> to vector<2x32xf32>
    %362 = arith.addf %359, %361 : vector<2x32xf32>
    %cst_61 = arith.constant 0.000000e+00 : f32
    %363 = vector.broadcast %cst_61 : f32 to vector<2x32xf32>
    %364 = arith.maximumf %362, %363 : vector<2x32xf32>
    %c0_62 = arith.constant 0 : index
    %c0_63 = arith.constant 0 : index
    %365 = vector.load %arg10[%c0_62, %c0_63] : memref<32x32xf32, #tpu.memory_space<vmem>>, vector<32x32xf32>
    %cst_64 = arith.constant dense<0.000000e+00> : vector<2x32xf32>
    %366 = tpu.matmul %364, %365, %cst_64 {dimension_numbers = #tpu.dot_dimension_numbers<[1], [0], [0], [1], [0, 0, 1, 1], [], []>} : vector<2x32xf32>, vector<32x32xf32>, vector<2x32xf32> -> vector<2x32xf32>
    %c0_65 = arith.constant 0 : index
    %c0_66 = arith.constant 0 : index
    %367 = vector.load %arg11[%c0_65, %c0_66] : memref<1x32xf32, #tpu.memory_space<vmem>>, vector<1x32xf32>
    %368 = vector.broadcast %367 : vector<1x32xf32> to vector<2x32xf32>
    %369 = arith.addf %366, %368 : vector<2x32xf32>
    %cst_67 = arith.constant 0.000000e+00 : f32
    %370 = vector.broadcast %cst_67 : f32 to vector<2x32xf32>
    %371 = arith.maximumf %369, %370 : vector<2x32xf32>
    %c0_68 = arith.constant 0 : index
    %c0_69 = arith.constant 0 : index
    %372 = vector.load %arg12[%c0_68, %c0_69] : memref<32x16xf32, #tpu.memory_space<vmem>>, vector<32x16xf32>
    %cst_70 = arith.constant dense<0.000000e+00> : vector<2x16xf32>
    %373 = tpu.matmul %371, %372, %cst_70 {dimension_numbers = #tpu.dot_dimension_numbers<[1], [0], [0], [1], [0, 0, 1, 1], [], []>} : vector<2x32xf32>, vector<32x16xf32>, vector<2x16xf32> -> vector<2x16xf32>
    %c0_71 = arith.constant 0 : index
    %c0_72 = arith.constant 0 : index
    %374 = vector.load %arg13[%c0_71, %c0_72] : memref<1x16xf32, #tpu.memory_space<vmem>>, vector<1x16xf32>
    %375 = vector.broadcast %374 : vector<1x16xf32> to vector<2x16xf32>
    %376 = arith.addf %373, %375 : vector<2x16xf32>
    %cst_73 = arith.constant dense<0.000000e+00> : vector<2xf32>
    %377 = vector.multi_reduction <add>, %376, %cst_73 [1] : vector<2x16xf32> to vector<2xf32>
    %378 = vector.shape_cast %377 : vector<2xf32> to vector<2x1xf32>
    %cst_74 = arith.constant 1.600000e+01 : f32
    %379 = vector.broadcast %cst_74 : f32 to vector<2x1xf32>
    %380 = arith.divf %378, %379 : vector<2x1xf32>
    %381 = vector.broadcast %380 : vector<2x1xf32> to vector<2x16xf32>
    %382 = arith.subf %376, %381 : vector<2x16xf32>
    %383 = arith.mulf %382, %382 : vector<2x16xf32>
    %cst_75 = arith.constant dense<0.000000e+00> : vector<2xf32>
    %384 = vector.multi_reduction <add>, %383, %cst_75 [1] : vector<2x16xf32> to vector<2xf32>
    %385 = vector.shape_cast %384 : vector<2xf32> to vector<2x1xf32>
    %cst_76 = arith.constant 1.600000e+01 : f32
    %386 = vector.broadcast %cst_76 : f32 to vector<2x1xf32>
    %387 = arith.divf %385, %386 : vector<2x1xf32>
    %388 = vector.broadcast %380 : vector<2x1xf32> to vector<2x16xf32>
    %389 = arith.subf %376, %388 : vector<2x16xf32>
    %cst_77 = arith.constant 9.99999974E-6 : f32
    %390 = vector.broadcast %cst_77 : f32 to vector<2x1xf32>
    %391 = arith.addf %387, %390 : vector<2x1xf32>
    %392 = math.rsqrt %391 : vector<2x1xf32>
    %393 = vector.broadcast %392 : vector<2x1xf32> to vector<2x16xf32>
    %394 = arith.mulf %389, %393 : vector<2x16xf32>
    %c0_78 = arith.constant 0 : index
    %c0_79 = arith.constant 0 : index
    %395 = vector.load %arg14[%c0_78, %c0_79] : memref<1x16xf32, #tpu.memory_space<vmem>>, vector<1x16xf32>
    %396 = vector.broadcast %395 : vector<1x16xf32> to vector<2x16xf32>
    %397 = arith.mulf %394, %396 : vector<2x16xf32>
    %c0_80 = arith.constant 0 : index
    %c0_81 = arith.constant 0 : index
    %398 = vector.load %arg15[%c0_80, %c0_81] : memref<1x16xf32, #tpu.memory_space<vmem>>, vector<1x16xf32>
    %399 = vector.broadcast %398 : vector<1x16xf32> to vector<2x16xf32>
    %400 = arith.addf %397, %399 : vector<2x16xf32>
    %c0_82 = arith.constant 0 : index
    %c0_83 = arith.constant 0 : index
    %401 = vector.load %arg16[%c0_82, %c0_83] : memref<2x16xf32, #tpu.memory_space<vmem>>, vector<2x16xf32>
    tpu.vector_store %arg16[%c0_82, %c0_83], %400 {strides = array<i32>} : memref<2x16xf32, #tpu.memory_space<vmem>>, vector<2x16xf32>,
    return
  }
}

</mosaic_0001>

<bundles_post_ra>
// kernel: text_encoder_forward.1
= control target key start
LH: loop header
LB: loop body
LE: loop exit
PB: predicated region body
PF: predicated region fallthrough
CT: control target
= control target key end

     0   :  { %s2292_s0 = inlined_call_operand.vmem [shape: s32[16,1], index: 0, kind: input, shape index: {}]   ;;  %s2293_s1 = inlined_call_operand.hbm [shape: f32[16,32], index: 1, kind: input, shape index: {}]   ;;  %s2294_s2 = inlined_call_operand.hbm [shape: bf16[32,128], index: 2, kind: input, shape index: {}]   ;;  %s2295_s3 = inlined_call_operand.hbm [shape: bf16[32,128], index: 3, kind: input, shape index: {}]   ;;  %s2296_s4 = inlined_call_operand.vmem [shape: f32[1,128], index: 4, kind: input, shape index: {}]   ;;  %s2297_s5 = inlined_call_operand.hbm [shape: bf16[32,128], index: 5, kind: input, shape index: {}]   ;;  %s2298_s6 = inlined_call_operand.hbm [shape: bf16[32,128], index: 6, kind: input, shape index: {}]   ;;  %s2299_s7 = inlined_call_operand.vmem [shape: f32[1,128], index: 7, kind: input, shape index: {}]   ;;  %s2300_s8 = inlined_call_operand.vmem [shape: f32[32,32], index: 8, kind: input, shape index: {}]   ;;  %s2301_s9 = inlined_call_operand.vmem [shape: f32[1,32], index: 9, kind: input, shape index: {}]   ;;  %s2302_s10 = inlined_call_operand.vmem [shape: f32[32,32], index: 10, kind: input, shape index: {}]   ;;  %s2303_s11 = inlined_call_operand.vmem [shape: f32[1,32], index: 11, kind: input, shape index: {}]   ;;  %s2304_s12 = inlined_call_operand.vmem [shape: f32[32,16], index: 12, kind: input, shape index: {}]   ;;  %s2305_s13 = inlined_call_operand.vmem [shape: f32[1,16], index: 13, kind: input, shape index: {}]   ;;  %s2306_s14 = inlined_call_operand.vmem [shape: f32[1,16], index: 14, kind: input, shape index: {}]   ;;  %s2307_s15 = inlined_call_operand.vmem [shape: f32[1,16], index: 15, kind: input, shape index: {}]   ;;  %s2308_s16 = inlined_call_operand.hbm [shape: f32[2,16], index: 16, kind: output, shape index: {}]  }
   0x1   :  { %2310 = sst [smem:[#allocation16_spill]] %s2292_s0 }
   0x2   :  { %21 = vsyncpa [#allocation3], 0 }
   0x3   :  { %22 = vsyncpa [#allocation6], 0 }
   0x4   :  { %23 = vsyncpa [#allocation9], 0  ;;  %s44_s23 = sshll.u32 %s2294_s2, 4  ;;  %s45_s23 = int_to_ptr.hbm [resolvable:$true] %s44_s23 }
   0x5   :  { %24 = vsyncpa [#allocation4], 0  ;;  %s1864_s24 = smov [#allocation5]   ;;  %s72_s28 = sshll.u32 %s2297_s5, 4  ;;  %s73_s28 = int_to_ptr.hbm [resolvable:$true] %s72_s28 }
   0x6   :  { %s46_s25 = sshll.u32 %s1864_s24, 4  ;;  %s1865_s29 = smov 64   ;;  %s47_s25 = int_to_ptr.vmem [resolvable:$true] %s46_s25 }
   0x7   :  { %s1866_s30 = smov 4   ;;  %s1867_s0 = smov [#allocation8]  }
   0x8   :  { %52 = dma.hbm_to_vmem [thread:$0]  %s45_s23, 256, %s47_s25, [#allocation6], %s1865_s29, %s1865_s29, %s1866_s30  }
   0x9   :  { %s74_s17 = sshll.u32 %s1867_s0, 4  ;;  %s31_s19 = sshll.u32 %s2293_s1, 4  ;;  %s75_s17 = int_to_ptr.vmem [resolvable:$true] %s74_s17  ;;  %s32_s19 = int_to_ptr.hbm [resolvable:$true] %s31_s19 }
   0xa   :  { %80 = dma.hbm_to_vmem [thread:$0]  %s73_s28, 256, %s75_s17, [#allocation9], %s1865_s29, %s1865_s29, %s1866_s30  }
   0xb   :  { %s1868_s5 = smov [#allocation2]   ;;  %s57_s23 = sshll.u32 %s2295_s3, 4  ;;  %s58_s23 = int_to_ptr.hbm [resolvable:$true] %s57_s23 }
   0xc   :  { %s33_s20 = sshll.u32 %s1868_s5, 4  ;;  %s1869_s24 = smov 128   ;;  %s34_s20 = int_to_ptr.vmem [resolvable:$true] %s33_s20 }
   0xd   :  { %s1870_s25 = smov 8   ;;  %s1871_s26 = smov [#allocation7]  }
   0xe   :  { %39 = dma.hbm_to_vmem [thread:$0]  %s32_s19, 256, %s34_s20, [#allocation3], %s1869_s24, %s1869_s24, %s1870_s25  }
   0xf   :  { %s59_s27 = sshll.u32 %s1871_s26, 4  ;;  %s85_s18 = sshll.u32 %s2298_s6, 4  ;;  %s60_s27 = int_to_ptr.vmem [resolvable:$true] %s59_s27  ;;  %s86_s18 = int_to_ptr.hbm [resolvable:$true] %s85_s18 }
  0x10   :  { %65 = dma.hbm_to_vmem [thread:$0]  %s58_s23, 256, %s60_s27, [#allocation6], %s1865_s29, %s1865_s29, %s1866_s30  }
  0x11   :  { %s1872_s28 = smov [#allocation10]  }
  0x12   :  { %s87_s17 = sshll.u32 %s1872_s28, 4  ;;  %s88_s17 = int_to_ptr.vmem [resolvable:$true] %s87_s17 }
  0x13   :  { %93 = dma.hbm_to_vmem [thread:$0]  %s86_s18, 256, %s88_s17, [#allocation9], %s1865_s29, %s1865_s29, %s1866_s30  }
  0x14   :  { %1856 = dma.done.wait [#allocation3], 256  }
  0x15   :  { %1857 = vsyncadd [#allocation3], 4294967040 }
  0x16   :  { %1858 = dma.done.wait [#allocation6], 512  }
  0x17   :  { %1859 = vsyncadd [#allocation6], 4294966784 }
  0x18   :  { %1860 = dma.done.wait [#allocation9], 512  }
  0x19   :  { %1861 = vsyncadd [#allocation9], 4294966784  ;;  %v1873_v0 = vmov 0   ;;  %s2311_s2 = sld [smem:[#allocation16_spill]]  ;;  %v150_v2 = vld [vmem:[#allocation2 + $0x8] sm:$0xff]  ;;  %v149_v4 = vld [vmem:[#allocation2] sm:$0xff]  ;;  %v135_v5 = vlaneseq }
  0x1a   :  { %1571 = vset.pattern.permute.xlu0 %v1873_v0  ;;  %172 = vmatpush.msra.mxu0 %v150_v2  ;;  %vm151_vm0 = vcmask 130048   ;;  %v1874_v8 = vmov 0.0   ;;  %v1550_v12 = vld [vmem:[#allocation5 + $0x8] sm:$0xff]  ;;  %v1549_v13 = vld [vmem:[#allocation5] sm:$0xff]  ;;  %vm215_vm3 = vcmask 261120   ;;  %s1875_s21 = smov 32  }
  0x1b   :  { %v136_v6 = vand.u32 127, %v135_v5  ;;  %225 = vmatpush.bf16.msra.mxu1 %v1550_v12  ;;  %v2000_v17 = vld [vmem:[%s2296_s4] ss:$0 sm:$0xff]  ;;  %v2013_v40 = vld [vmem:[#allocation8 + $0x8] sm:$0xff]  ;;  %v2015_v41 = vld [vmem:[#allocation7 + $0x8] sm:$0xff]  ;;  %s1877_s18 = smov [#allocation11]  }
  0x1c   :  { %173 = vmatpush.msra.mxu0 %v149_v4  ;;  %298 = vmatpush.bf16.msra.mxu2 %v2013_v40  ;;  %v2019_v42 = vld [vmem:[#allocation8] sm:$0xff]  ;;  %v2021_v43 = vld [vmem:[#allocation7] sm:$0xff]  ;;  %s1457_s28 = sshll.u32 %s1877_s18, 4  ;;  %s1459_s6 = sshll.u32 %s2308_s16, 4  ;;  %s1458_s28 = int_to_ptr.vmem [resolvable:$true] %s1457_s28  ;;  %s1460_s6 = int_to_ptr.hbm [resolvable:$true] %s1459_s6 }
  0x1d   :  { %360 = vmatpush.bf16.msra.mxu3 %v2015_v41  ;;  %v2039_v48 = vld [vmem:[%s2299_s7] ss:$0 sm:$0xff] }
  0x1e   :  { %425 = vmatpush.bf16.msrb.mxu0 %v2013_v40 }
  0x1f   :  { %v133_v1 = vld [vmem:[%s2311_s2] sm:$0xff]  ;;  %v134_v3 = vld [vmem:[%s2311_s2 + $0x8] sm:$0xff]  ;;  %226 = vmatpush.bf16.msra.mxu1 %v1549_v13 }
  0x20   :  { %138 = vperm.xlu0 %1571, %v133_v1   ;;  %299 = vmatpush.bf16.msra.mxu2 %v2019_v42 }
  0x21   :  { %361 = vmatpush.bf16.msra.mxu3 %v2021_v43 }
  0x22   :  { %426 = vmatpush.bf16.msrb.mxu0 %v2019_v42 }
  0x24   :  { %508 = vmatpush.bf16.msrb.mxu2 %v2015_v41 }
  0x25   :  { %573 = vmatpush.bf16.msrb.mxu3 %v2013_v40 }
  0x28   :  { %141 = vperm.xlu0 %1571, %v134_v3   ;;  %509 = vmatpush.bf16.msrb.mxu2 %v2021_v43 }
  0x29   :  { %574 = vmatpush.bf16.msrb.mxu3 %v2019_v42 }
  0x92   :  { %v139_v7 = vpop.permute.xlu0 %138 }
  0x93   :  { %vm143_vm1 = vcmp.eq.s32.totalorder %v136_v6, %v139_v7 }
  0x94   :  { %v1471_v9 = vsel %vm143_vm1, 1.0, %v1874_v8 }
  0x95   :  { %1473 = vmatmul.msk.f32.vlgmr.msra.gmra.mxu0 %vm151_vm0, %v1471_v9 }
  0x9a   :  { %v142_v10 = vpop.permute.xlu0 %141 }
  0x9b   :  { %vm144_vm2 = vcmp.eq.s32.totalorder %v136_v6, %v142_v10 }
  0x9c   :  { %v1472_v11 = vsel %vm144_vm2, 1.0, %v1874_v8 }
  0x9d   :  { %1474 = vmatmul.msk.f32.gmra.mxu0 %vm151_vm0, %v1472_v11 }
 0x112   :  { %v175_v14 = vpop.f32.mrf.mxu0 }
 0x11a   :  { %v178_v15 = vpop.f32.mrf.mxu0 }
 0x11b   :  { %v199_v16 = vpack.c.bf16 %v178_v15, %v175_v14 }
 0x11d   :  { %1483 = vmatmul.msk.bf16.vlgmr.msra.gmra.mxu1 %vm215_vm3, %v199_v16 }
 0x19a   :  { %v228_v18 = vpop.f32.mrf.mxu1 }
 0x19b   :  { %v2003_v19 = vadd.f32 %v2000_v17, %v228_v18 }
 0x19d   :  { %1579 = vtanh.f32 %v2003_v19  ;;  %v1484_v21 = vmul.f32 -1.442695, %v2003_v19 }
 0x19f   :  { %1581 = vpow2.f32 %v1484_v21 }
 0x1a3   :  { %v1580_v20 = vpop.eup %1579 }
 0x1a4   :  { %255 = vrot.lane.b32.xlu1 %v1580_v20, %s1875_s21 }
 0x1a5   :  { %v1582_v22 = vpop.eup %1581 }
 0x1a6   :  { %v236_v23 = vadd.f32 1.0, %v1582_v22 }
 0x1a8   :  { %1583 = vrcp.f32 %v236_v23  ;;  %v248_v29 = vand.u32 2147483648, %v236_v23  ;;  %vm242_vm5 = vweird.f32 %v236_v23  ;;  %v246_v30 = vand.u32 2147483647, %v236_v23 }
 0x1aa   :  { %v249_v32 = vor.u32 1.1754944e-38, %v248_v29  ;;  %vm247_vm7 = vcmp.eq.f32.partialorder %v246_v30, 8.507059e+37 }
 0x1ae   :  { %v1584_v24 = vpop.eup %1583 }
 0x1af   :  { %v238_v25 = vmul.f32 %v1584_v24, %v236_v23  ;;  %vm243_vm4 = vweird.f32 %v1584_v24 }
 0x1b0   :  { %vm244_vm6 = vmor %vm242_vm5, %vm243_vm4 }
 0x1b1   :  { %v239_v26 = vsub.f32 1.0, %v238_v25 }
 0x1b3   :  { %v240_v27 = vmul.f32 %v1584_v24, %v239_v26 }
 0x1b5   :  { %v241_v28 = vadd.f32 %v1584_v24, %v240_v27 }
 0x1b7   :  { %v245_v31 = vsel %vm244_vm6, %v1584_v24, %v241_v28 }
 0x1b8   :  { %v250_v34 = vsel %vm247_vm7, %v249_v32, %v245_v31 }
 0x1b9   :  { %v253_v36 = vmul.f32 0.0, %v250_v34 }
 0x216   :  { %v256_v33 = vpop.permute.xlu1 %255 }
 0x217   :  { %v258_v35 = vmul.f32 %v256_v33, %v250_v34 }
 0x219   :  { %260 = vrot.lane.b32.xlu1 %v258_v35, %s1875_s21  ;;  %v2056_v35 = vld [vmem:[#allocation10 + $0x8] sm:$0xff] }
 0x21a   :  { %457 = vmatpush.bf16.msrb.mxu1 %v2056_v35  ;;  %593 = vmatpush.bf16.msra.mxu0 %v2056_v35 }
 0x28b   :  { %v261_v37 = vpop.permute.xlu1 %260 }
 0x28c   :  { %v2009_v38 = vadd.f32 %v261_v37, %v253_v36  ;;  %v2059_v36 = vld [vmem:[#allocation10] sm:$0xff] }
 0x28d   :  { %458 = vmatpush.bf16.msrb.mxu1 %v2059_v36  ;;  %594 = vmatpush.bf16.msra.mxu0 %v2059_v36 }
 0x28e   :  { %1585 = vtanh.f32 %v2009_v38  ;;  %v392_v26 = vrot.slane %v2009_v38, 6 }
 0x291   :  { %644 = vmatpush.bf16.msra.mxu1 %v2015_v41 }
 0x294   :  { %v1586_v39 = vpop.eup %1585 }
 0x295   :  { %266 = vrot.lane.b32.xlu2 %v1586_v39, %s1875_s21  ;;  %645 = vmatpush.bf16.msra.mxu1 %v2021_v43 }
 0x2ef   :  { %v267_v44 = vpop.permute.xlu2 %266 }
 0x2f0   :  { %v269_v45 = vmul.f32 %v267_v44, %v250_v34 }
 0x2f2   :  { %v270_v46 = vpack.c.bf16 %v269_v45, %v269_v45 }
 0x2f4   :  { %275 = vrot.lane.b32.xlu2 %v270_v46, %s1865_s29 }
 0x34e   :  { %v276_v47 = vpop.permute.xlu2 %275 }
 0x34f   :  { %1493 = vmatmul.msk.bf16.vlgmr.msra.gmra.mxu2 %vm215_vm3, %v276_v47  ;;  %1503 = vmatmul.msk.bf16.vlgmr.msra.gmra.mxu3 %vm215_vm3, %v276_v47 }
 0x350   :  { %709 = vmatpush.bf16.msra.mxu2 %v2013_v40  ;;  %729 = vmatpush.bf16.msra.mxu3 %v2056_v35 }
 0x354   :  { %710 = vmatpush.bf16.msra.mxu2 %v2019_v42  ;;  %730 = vmatpush.bf16.msra.mxu3 %v2059_v36 }
 0x3d2   :  { %v301_v49 = vpop.f32.mrf.mxu2  ;;  %v363_v50 = vpop.f32.mrf.mxu3 }
 0x3d3   :  { %v302_v51 = vadd.f32 %v2039_v48, %v301_v49  ;;  %v368_v52 = vrot.slane %v363_v50, 6 }
 0x3d5   :  { %1587 = vtanh.f32 %v302_v51  ;;  %v370_v53 = vadd.f32 %v368_v52, %v2003_v19  ;;  %v1494_v58 = vmul.f32 -1.442695, %v302_v51  ;;  %v2079_v51 = vpop.f32.mrf.mxu1 }
 0x3d7   :  { %1589 = vtanh.f32 %v370_v53  ;;  %v1504_v59 = vmul.f32 -1.442695, %v370_v53 }
 0x3d8   :  { %1591 = vpow2.f32 %v1494_v58 }
 0x3d9   :  { %1593 = vpow2.f32 %v1504_v59 }
 0x3da   :  { %v303_v54 = vpop.f32.mrf.mxu2  ;;  %v365_v55 = vpop.f32.mrf.mxu3 }
 0x3db   :  { %v1588_v56 = vpop.eup %1587 }
 0x3dc   :  { %327 = vrot.lane.b32.xlu1 %v1588_v56, %s1875_s21 }
 0x3dd   :  { %v1590_v57 = vpop.eup %1589 }
 0x3de   :  { %396 = vrot.lane.b32.xlu0 %v1590_v57, %s1875_s21  ;;  %v1592_v60 = vpop.eup %1591 }
 0x3df   :  { %v1594_v61 = vpop.eup %1593  ;;  %v308_v62 = vadd.f32 1.0, %v1592_v60 }
 0x3e0   :  { %v374_v63 = vadd.f32 1.0, %v1594_v61 }
 0x3e1   :  { %1595 = vrcp.f32 %v308_v62  ;;  %v320_v9 = vand.u32 2147483648, %v308_v62  ;;  %vm314_vm9 = vweird.f32 %v308_v62  ;;  %v318_v10 = vand.u32 2147483647, %v308_v62 }
 0x3e2   :  { %1597 = vrcp.f32 %v374_v63  ;;  %v386_v13 = vand.u32 2147483648, %v374_v63  ;;  %vm380_vm12 = vweird.f32 %v374_v63  ;;  %v384_v15 = vand.u32 2147483647, %v374_v63 }
 0x3e3   :  { %v321_v14 = vor.u32 1.1754944e-38, %v320_v9  ;;  %vm319_vm13 = vcmp.eq.f32.partialorder %v318_v10, 8.507059e+37 }
 0x3e4   :  { %v387_v22 = vor.u32 1.1754944e-38, %v386_v13  ;;  %vm385_vm15 = vcmp.eq.f32.partialorder %v384_v15, 8.507059e+37 }
 0x3e7   :  { %v1596_v0 = vpop.eup %1595 }
 0x3e8   :  { %v1598_v1 = vpop.eup %1597  ;;  %v310_v2 = vmul.f32 %v1596_v0, %v308_v62  ;;  %vm315_vm8 = vweird.f32 %v1596_v0 }
 0x3e9   :  { %v376_v3 = vmul.f32 %v1598_v1, %v374_v63  ;;  %vm316_vm10 = vmor %vm314_vm9, %vm315_vm8  ;;  %vm381_vm11 = vweird.f32 %v1598_v1 }
 0x3ea   :  { %v311_v4 = vsub.f32 1.0, %v310_v2  ;;  %vm382_vm14 = vmor %vm380_vm12, %vm381_vm11 }
 0x3eb   :  { %v377_v5 = vsub.f32 1.0, %v376_v3 }
 0x3ec   :  { %v312_v6 = vmul.f32 %v1596_v0, %v311_v4 }
 0x3ed   :  { %v378_v7 = vmul.f32 %v1598_v1, %v377_v5 }
 0x3ee   :  { %v313_v8 = vadd.f32 %v1596_v0, %v312_v6 }
 0x3ef   :  { %v379_v11 = vadd.f32 %v1598_v1, %v378_v7 }
 0x3f0   :  { %v317_v12 = vsel %vm316_vm10, %v1596_v0, %v313_v8 }
 0x3f1   :  { %v322_v18 = vsel %vm319_vm13, %v321_v14, %v317_v12  ;;  %v383_v20 = vsel %vm382_vm14, %v1598_v1, %v379_v11 }
 0x3f2   :  { %v388_v24 = vsel %vm385_vm15, %v387_v22, %v383_v20  ;;  %v325_v31 = vmul.f32 0.0, %v322_v18 }
 0x3f3   :  { %v394_v27 = vmul.f32 %v392_v26, %v388_v24 }
 0x44e   :  { %v328_v16 = vpop.permute.xlu1 %327 }
 0x44f   :  { %v330_v21 = vmul.f32 %v328_v16, %v322_v18 }
 0x450   :  { %v397_v23 = vpop.permute.xlu0 %396 }
 0x451   :  { %332 = vrot.lane.b32.xlu0 %v330_v21, %s1875_s21  ;;  %v399_v25 = vmul.f32 %v397_v23, %v388_v24 }
 0x453   :  { %401 = vrot.lane.b32.xlu2 %v399_v25, %s1875_s21 }
 0x4ad   :  { %v402_v28 = vpop.permute.xlu2 %401 }
 0x4ae   :  { %v2048_v29 = vadd.f32 %v402_v28, %v394_v27 }
 0x4b0   :  { %1599 = vtanh.f32 %v2048_v29 }
 0x4b6   :  { %v1600_v30 = vpop.eup %1599 }
 0x4b7   :  { %407 = vrot.lane.b32.xlu1 %v1600_v30, %s1875_s21 }
 0x4c3   :  { %v333_v32 = vpop.permute.xlu0 %332 }
 0x4c4   :  { %v2052_v33 = vadd.f32 %v333_v32, %v325_v31 }
 0x4c6   :  { %1601 = vtanh.f32 %v2052_v33 }
 0x4cc   :  { %v1602_v34 = vpop.eup %1601 }
 0x4cd   :  { %338 = vrot.lane.b32.xlu2 %v1602_v34, %s1875_s21 }
 0x527   :  { %v339_v37 = vpop.permute.xlu2 %338 }
 0x528   :  { %v341_v38 = vmul.f32 %v339_v37, %v322_v18 }
 0x529   :  { %v408_v44 = vpop.permute.xlu1 %407 }
 0x52a   :  { %v432_v39 = vpack.c.bf16 %v341_v38, %v341_v38  ;;  %v410_v45 = vmul.f32 %v408_v44, %v388_v24 }
 0x52c   :  { %434 = vrot.lane.b32.xlu1 %v432_v39, %s1865_s29  ;;  %v411_v46 = vpack.c.bf16 %v410_v45, %v410_v45  ;;  %v540_v39 = vrot.slane %v2048_v29, 6 }
 0x52e   :  { %v413_v47 = vrot.slane %v411_v46, 1 }
 0x530   :  { %414 = vrot.lane.b32.xlu0 %v413_v47, %s1865_s29 }
 0x59e   :  { %v435_v49 = vpop.permute.xlu1 %434 }
 0x59f   :  { %1514 = vmatmul.msk.bf16.vlgmr.msrb.gmra.mxu1 %vm215_vm3, %v435_v49 }
 0x5a0   :  { %841 = vmatpush.bf16.msrb.mxu1 %v2013_v40 }
 0x5a2   :  { %v415_v50 = vpop.permute.xlu0 %414 }
 0x5a3   :  { %1505 = vmatmul.msk.bf16.vlgmr.msrb.gmra.mxu0 %vm215_vm3, %v415_v50  ;;  %1516 = vmatmul.msk.bf16.vlgmr.msrb.gmra.mxu2 %vm215_vm3, %v415_v50 }
 0x5a4   :  { %780 = vmatpush.bf16.msrb.mxu0 %v2015_v41  ;;  %842 = vmatpush.bf16.msrb.mxu1 %v2019_v42 }
 0x5a5   :  { %861 = vmatpush.bf16.msrb.mxu2 %v2056_v35 }
 0x5a8   :  { %781 = vmatpush.bf16.msrb.mxu0 %v2021_v43 }
 0x5a9   :  { %862 = vmatpush.bf16.msrb.mxu2 %v2059_v36 }
 0x61c   :  { %v460_v52 = vpop.f32.mrf.mxu1 }
 0x620   :  { %v428_v53 = vpop.f32.mrf.mxu0 }
 0x621   :  { %v429_v54 = vadd.f32 %v2039_v48, %v428_v53 }
 0x623   :  { %v464_v55 = vadd.f32 %v460_v52, %v429_v54 }
 0x624   :  { %v462_v56 = vpop.f32.mrf.mxu1 }
 0x625   :  { %1603 = vtanh.f32 %v464_v55  ;;  %v1515_v3 = vmul.f32 -1.442695, %v464_v55 }
 0x626   :  { %v511_v57 = vpop.f32.mrf.mxu2 }
 0x627   :  { %v516_v58 = vrot.slane %v511_v57, 4 }
 0x628   :  { %v430_v59 = vpop.f32.mrf.mxu0 }
 0x629   :  { %v518_v60 = vadd.f32 %v516_v58, %v2003_v19 }
 0x62b   :  { %v1604_v61 = vpop.eup %1603  ;;  %1605 = vtanh.f32 %v518_v60  ;;  %v1517_v0 = vmul.f32 -1.442695, %v518_v60 }
 0x62c   :  { %487 = vrot.lane.b32.xlu0 %v1604_v61, %s1875_s21 }
 0x62d   :  { %1607 = vpow2.f32 %v1517_v0 }
 0x62e   :  { %v513_v62 = vpop.f32.mrf.mxu2 }
 0x631   :  { %v1606_v63 = vpop.eup %1605 }
 0x632   :  { %544 = vrot.lane.b32.xlu2 %v1606_v63, %s1875_s21 }
 0x633   :  { %v1608_v1 = vpop.eup %1607 }
 0x634   :  { %v522_v2 = vadd.f32 1.0, %v1608_v1 }
 0x636   :  { %1609 = vrcp.f32 %v522_v2  ;;  %v534_v11 = vand.u32 2147483648, %v522_v2  ;;  %vm528_vm1 = vweird.f32 %v522_v2  ;;  %v532_v12 = vand.u32 2147483647, %v522_v2 }
 0x637   :  { %1611 = vpow2.f32 %v1515_v3 }
 0x638   :  { %v535_v15 = vor.u32 1.1754944e-38, %v534_v11  ;;  %vm533_vm4 = vcmp.eq.f32.partialorder %v532_v12, 8.507059e+37 }
 0x63c   :  { %v1610_v4 = vpop.eup %1609 }
 0x63d   :  { %v524_v5 = vmul.f32 %v1610_v4, %v522_v2  ;;  %v1612_v6 = vpop.eup %1611  ;;  %vm529_vm0 = vweird.f32 %v1610_v4 }
 0x63e   :  { %v468_v8 = vadd.f32 1.0, %v1612_v6  ;;  %vm530_vm2 = vmor %vm528_vm1, %vm529_vm0 }
 0x63f   :  { %v525_v7 = vsub.f32 1.0, %v524_v5 }
 0x640   :  { %1613 = vrcp.f32 %v468_v8  ;;  %v480_v25 = vand.u32 2147483648, %v468_v8  ;;  %vm474_vm6 = vweird.f32 %v468_v8  ;;  %v478_v26 = vand.u32 2147483647, %v468_v8 }
 0x641   :  { %v526_v9 = vmul.f32 %v1610_v4, %v525_v7 }
 0x642   :  { %v481_v28 = vor.u32 1.1754944e-38, %v480_v25  ;;  %vm479_vm8 = vcmp.eq.f32.partialorder %v478_v26, 8.507059e+37 }
 0x643   :  { %v527_v10 = vadd.f32 %v1610_v4, %v526_v9 }
 0x645   :  { %v531_v14 = vsel %vm530_vm2, %v1610_v4, %v527_v10 }
 0x646   :  { %v1614_v13 = vpop.eup %1613  ;;  %v536_v18 = vsel %vm533_vm4, %v535_v15, %v531_v14 }
 0x647   :  { %v470_v16 = vmul.f32 %v1614_v13, %v468_v8  ;;  %vm475_vm5 = vweird.f32 %v1614_v13  ;;  %v542_v44 = vmul.f32 %v540_v39, %v536_v18 }
 0x648   :  { %vm476_vm7 = vmor %vm474_vm6, %vm475_vm5 }
 0x649   :  { %v471_v22 = vsub.f32 1.0, %v470_v16 }
 0x64b   :  { %v472_v23 = vmul.f32 %v1614_v13, %v471_v22 }
 0x64d   :  { %v473_v24 = vadd.f32 %v1614_v13, %v472_v23 }
 0x64f   :  { %v477_v27 = vsel %vm476_vm7, %v1614_v13, %v473_v24 }
 0x650   :  { %v482_v31 = vsel %vm479_vm8, %v481_v28, %v477_v27 }
 0x651   :  { %v485_v34 = vmul.f32 %v482_v31, %v2052_v33 }
 0x68c   :  { %v545_v20 = vpop.permute.xlu2 %544 }
 0x68d   :  { %v547_v21 = vmul.f32 %v545_v20, %v536_v18 }
 0x68f   :  { %549 = vrot.lane.b32.xlu1 %v547_v21, %s1875_s21 }
 0x69e   :  { %v488_v30 = vpop.permute.xlu0 %487 }
 0x69f   :  { %v490_v32 = vmul.f32 %v488_v30, %v482_v31 }
 0x6a1   :  { %492 = vrot.lane.b32.xlu2 %v490_v32, %s1875_s21 }
 0x6fb   :  { %v493_v37 = vpop.permute.xlu2 %492 }
 0x6fc   :  { %v2088_v38 = vadd.f32 %v493_v37, %v485_v34 }
 0x6fe   :  { %1615 = vtanh.f32 %v2088_v38 }
 0x701   :  { %v550_v45 = vpop.permute.xlu1 %549 }
 0x702   :  { %v2092_v46 = vadd.f32 %v550_v45, %v542_v44 }
 0x704   :  { %v1616_v47 = vpop.eup %1615  ;;  %1617 = vtanh.f32 %v2092_v46 }
 0x705   :  { %498 = vrot.lane.b32.xlu1 %v1616_v47, %s1875_s21 }
 0x70a   :  { %v1618_v49 = vpop.eup %1617 }
 0x70b   :  { %555 = vrot.lane.b32.xlu0 %v1618_v49, %s1875_s21 }
 0x777   :  { %v499_v33 = vpop.permute.xlu1 %498 }
 0x778   :  { %v501_v50 = vmul.f32 %v499_v33, %v482_v31 }
 0x77a   :  { %v580_v52 = vpack.c.bf16 %v501_v50, %v501_v50  ;;  %v676_v50 = vrot.slane %v2092_v46, 6 }
 0x77c   :  { %582 = vrot.lane.b32.xlu0 %v580_v52, %s1865_s29 }
 0x77d   :  { %v556_v29 = vpop.permute.xlu0 %555 }
 0x77e   :  { %v558_v53 = vmul.f32 %v556_v29, %v536_v18 }
 0x780   :  { %v559_v54 = vpack.c.bf16 %v558_v53, %v558_v53 }
 0x782   :  { %v561_v55 = vrot.slane %v559_v54, 2 }
 0x784   :  { %562 = vrot.lane.b32.xlu2 %v561_v55, %s1865_s29 }
 0x7de   :  { %v563_v56 = vpop.permute.xlu2 %562 }
 0x7df   :  { %1518 = vmatmul.msk.bf16.vlgmr.msrb.gmra.mxu3 %vm215_vm3, %v563_v56  ;;  %1521 = vmatmul.msk.bf16.vlgmr.msra.gmra.mxu1 %vm215_vm3, %v563_v56 }
 0x7e0   :  { %912 = vmatpush.bf16.msrb.mxu3 %v2015_v41  ;;  %997 = vmatpush.bf16.msra.mxu1 %v2056_v35 }
 0x7e4   :  { %913 = vmatpush.bf16.msrb.mxu3 %v2021_v43  ;;  %998 = vmatpush.bf16.msra.mxu1 %v2059_v36 }
 0x7ee   :  { %v583_v57 = vpop.permute.xlu0 %582 }
 0x7ef   :  { %1519 = vmatmul.msk.bf16.vlgmr.msra.gmra.mxu0 %vm215_vm3, %v583_v57 }
 0x7f0   :  { %977 = vmatpush.bf16.msra.mxu0 %v2013_v40 }
 0x7f4   :  { %978 = vmatpush.bf16.msra.mxu0 %v2019_v42 }
 0x85c   :  { %v647_v58 = vpop.f32.mrf.mxu1 }
 0x85d   :  { %v652_v59 = vrot.slane %v647_v58, 2 }
 0x85f   :  { %v654_v60 = vadd.f32 %v652_v59, %v2003_v19 }
 0x861   :  { %1619 = vtanh.f32 %v654_v60  ;;  %v1522_v19 = vmul.f32 -1.442695, %v654_v60 }
 0x862   :  { %v576_v61 = vpop.f32.mrf.mxu3 }
 0x863   :  { %v577_v1 = vadd.f32 %v2039_v48, %v576_v61 }
 0x864   :  { %v649_v62 = vpop.f32.mrf.mxu1 }
 0x867   :  { %v1620_v63 = vpop.eup %1619 }
 0x868   :  { %680 = vrot.lane.b32.xlu1 %v1620_v63, %s1875_s21 }
 0x86a   :  { %v578_v0 = vpop.f32.mrf.mxu3 }
 0x86b   :  { %v2137_v0 = vadd.f32 %v2000_v17, %v2079_v51 }
 0x86c   :  { %v596_v2 = vpop.f32.mrf.mxu0 }
 0x86d   :  { %v600_v3 = vadd.f32 %v596_v2, %v577_v1 }
 0x86f   :  { %1621 = vtanh.f32 %v600_v3  ;;  %v1520_v6 = vmul.f32 -1.442695, %v600_v3 }
 0x871   :  { %1623 = vpow2.f32 %v1520_v6 }
 0x872   :  { %1625 = vpow2.f32 %v1522_v19 }
 0x874   :  { %v598_v4 = vpop.f32.mrf.mxu0 }
 0x875   :  { %v1622_v5 = vpop.eup %1621 }
 0x876   :  { %623 = vrot.lane.b32.xlu2 %v1622_v5, %s1875_s21 }
 0x877   :  { %v1624_v7 = vpop.eup %1623 }
 0x878   :  { %v604_v8 = vadd.f32 1.0, %v1624_v7  ;;  %v1626_v9 = vpop.eup %1625 }
 0x879   :  { %v658_v11 = vadd.f32 1.0, %v1626_v9 }
 0x87a   :  { %1627 = vrcp.f32 %v604_v8  ;;  %v616_v20 = vand.u32 2147483648, %v604_v8  ;;  %vm610_vm10 = vweird.f32 %v604_v8  ;;  %v614_v21 = vand.u32 2147483647, %v604_v8 }
 0x87b   :  { %1629 = vrcp.f32 %v658_v11  ;;  %v670_v31 = vand.u32 2147483648, %v658_v11  ;;  %vm664_vm14 = vweird.f32 %v658_v11  ;;  %v668_v32 = vand.u32 2147483647, %v658_v11 }
 0x87c   :  { %v617_v24 = vor.u32 1.1754944e-38, %v616_v20  ;;  %vm615_vm12 = vcmp.eq.f32.partialorder %v614_v21, 8.507059e+37 }
 0x87d   :  { %v671_v37 = vor.u32 1.1754944e-38, %v670_v31  ;;  %vm669_vm0 = vcmp.eq.f32.partialorder %v668_v32, 8.507059e+37 }
 0x880   :  { %v1628_v10 = vpop.eup %1627 }
 0x881   :  { %v606_v12 = vmul.f32 %v1628_v10, %v604_v8  ;;  %v1630_v14 = vpop.eup %1629  ;;  %vm611_vm9 = vweird.f32 %v1628_v10 }
 0x882   :  { %v660_v16 = vmul.f32 %v1630_v14, %v658_v11  ;;  %vm612_vm11 = vmor %vm610_vm10, %vm611_vm9  ;;  %vm665_vm13 = vweird.f32 %v1630_v14 }
 0x883   :  { %v607_v13 = vsub.f32 1.0, %v606_v12  ;;  %vm666_vm15 = vmor %vm664_vm14, %vm665_vm13 }
 0x884   :  { %v661_v22 = vsub.f32 1.0, %v660_v16 }
 0x885   :  { %v608_v15 = vmul.f32 %v1628_v10, %v607_v13 }
 0x886   :  { %v662_v25 = vmul.f32 %v1630_v14, %v661_v22 }
 0x887   :  { %v609_v18 = vadd.f32 %v1628_v10, %v608_v15 }
 0x888   :  { %v663_v30 = vadd.f32 %v1630_v14, %v662_v25 }
 0x889   :  { %v613_v23 = vsel %vm612_vm11, %v1628_v10, %v609_v18 }
 0x88a   :  { %v618_v27 = vsel %vm615_vm12, %v617_v24, %v613_v23  ;;  %v667_v34 = vsel %vm666_vm15, %v1630_v14, %v663_v30 }
 0x88b   :  { %v672_v44 = vsel %vm669_vm0, %v671_v37, %v667_v34  ;;  %v621_v47 = vmul.f32 %v618_v27, %v2088_v38 }
 0x88c   :  { %v678_v29 = vmul.f32 %v676_v50, %v672_v44 }
 0x8d0   :  { %v624_v26 = vpop.permute.xlu2 %623 }
 0x8d1   :  { %v626_v28 = vmul.f32 %v624_v26, %v618_v27 }
 0x8d3   :  { %628 = vrot.lane.b32.xlu1 %v626_v28, %s1875_s21 }
 0x8da   :  { %v681_v39 = vpop.permute.xlu1 %680 }
 0x8db   :  { %v683_v45 = vmul.f32 %v681_v39, %v672_v44 }
 0x8dd   :  { %685 = vrot.lane.b32.xlu0 %v683_v45, %s1875_s21 }
 0x945   :  { %v629_v49 = vpop.permute.xlu1 %628 }
 0x946   :  { %v2115_v33 = vadd.f32 %v629_v49, %v621_v47 }
 0x948   :  { %1631 = vtanh.f32 %v2115_v33 }
 0x94e   :  { %v1632_v52 = vpop.eup %1631 }
 0x94f   :  { %v686_v53 = vpop.permute.xlu0 %685  ;;  %634 = vrot.lane.b32.xlu0 %v1632_v52, %s1875_s21 }
 0x950   :  { %v2120_v54 = vadd.f32 %v686_v53, %v678_v29 }
 0x952   :  { %1633 = vtanh.f32 %v2120_v54  ;;  %v809_v52 = vrot.slane %v2120_v54, 6 }
 0x958   :  { %v1634_v55 = vpop.eup %1633 }
 0x959   :  { %691 = vrot.lane.b32.xlu2 %v1634_v55, %s1875_s21 }
 0x9b3   :  { %v692_v38 = vpop.permute.xlu2 %691 }
 0x9b4   :  { %v694_v56 = vmul.f32 %v692_v38, %v672_v44 }
 0x9b6   :  { %v695_v57 = vpack.c.bf16 %v694_v56, %v694_v56 }
 0x9b8   :  { %v697_v58 = vrot.slane %v695_v57, 3 }
 0x9ba   :  { %698 = vrot.lane.b32.xlu1 %v697_v58, %s1865_s29 }
 0x9c1   :  { %v635_v59 = vpop.permute.xlu0 %634 }
 0x9c2   :  { %v637_v46 = vmul.f32 %v635_v59, %v618_v27 }
 0x9c4   :  { %v716_v60 = vpack.c.bf16 %v637_v46, %v637_v46 }
 0x9c6   :  { %718 = vrot.lane.b32.xlu2 %v716_v60, %s1865_s29 }
 0xa20   :  { %v719_v61 = vpop.permute.xlu2 %718 }
 0xa21   :  { %1524 = vmatmul.msk.bf16.vlgmr.msra.gmra.mxu3 %vm215_vm3, %v719_v61 }
 0xa22   :  { %1113 = vmatpush.bf16.msra.mxu3 %v2013_v40 }
 0xa26   :  { %1114 = vmatpush.bf16.msra.mxu3 %v2019_v42 }
 0xa2c   :  { %v699_v62 = vpop.permute.xlu1 %698 }
 0xa2d   :  { %1523 = vmatmul.msk.bf16.vlgmr.msra.gmra.mxu2 %vm215_vm3, %v699_v62  ;;  %1526 = vmatmul.msk.bf16.vlgmr.msrb.gmra.mxu0 %vm215_vm3, %v699_v62 }
 0xa2e   :  { %1048 = vmatpush.bf16.msra.mxu2 %v2015_v41  ;;  %1133 = vmatpush.bf16.msrb.mxu0 %v2056_v35 }
 0xa32   :  { %1049 = vmatpush.bf16.msra.mxu2 %v2021_v43  ;;  %1134 = vmatpush.bf16.msrb.mxu0 %v2059_v36 }
 0xaa4   :  { %v732_v63 = vpop.f32.mrf.mxu3 }
 0xaaa   :  { %v783_v1 = vpop.f32.mrf.mxu0 }
 0xaab   :  { %v787_v2 = vadd.f32 %v783_v1, %v2137_v0 }
 0xaac   :  { %v734_v3 = vpop.f32.mrf.mxu3 }
 0xaad   :  { %1635 = vtanh.f32 %v787_v2  ;;  %v1527_v17 = vmul.f32 -1.442695, %v787_v2 }
 0xab0   :  { %v712_v4 = vpop.f32.mrf.mxu2 }
 0xab1   :  { %v713_v5 = vadd.f32 %v2039_v48, %v712_v4 }
 0xab2   :  { %v785_v6 = vpop.f32.mrf.mxu0 }
 0xab3   :  { %v1636_v7 = vpop.eup %1635  ;;  %v736_v19 = vadd.f32 %v732_v63, %v713_v5 }
 0xab4   :  { %813 = vrot.lane.b32.xlu0 %v1636_v7, %s1875_s21 }
 0xab5   :  { %1637 = vtanh.f32 %v736_v19  ;;  %v1525_v51 = vmul.f32 -1.442695, %v736_v19 }
 0xab6   :  { %1639 = vpow2.f32 %v1527_v17 }
 0xab7   :  { %1641 = vpow2.f32 %v1525_v51 }
 0xab8   :  { %v714_v8 = vpop.f32.mrf.mxu2 }
 0xabb   :  { %v1638_v9 = vpop.eup %1637 }
 0xabc   :  { %759 = vrot.lane.b32.xlu1 %v1638_v9, %s1875_s21  ;;  %v1640_v10 = vpop.eup %1639 }
 0xabd   :  { %v791_v11 = vadd.f32 1.0, %v1640_v10  ;;  %v1642_v12 = vpop.eup %1641 }
 0xabe   :  { %v740_v13 = vadd.f32 1.0, %v1642_v12 }
 0xabf   :  { %1643 = vrcp.f32 %v791_v11  ;;  %v803_v24 = vand.u32 2147483648, %v791_v11  ;;  %vm797_vm2 = vweird.f32 %v791_v11  ;;  %v801_v25 = vand.u32 2147483647, %v791_v11 }
 0xac0   :  { %1645 = vrcp.f32 %v740_v13  ;;  %v752_v37 = vand.u32 2147483648, %v740_v13  ;;  %vm746_vm7 = vweird.f32 %v740_v13  ;;  %v750_v39 = vand.u32 2147483647, %v740_v13 }
 0xac1   :  { %v804_v28 = vor.u32 1.1754944e-38, %v803_v24  ;;  %vm802_vm5 = vcmp.eq.f32.partialorder %v801_v25, 8.507059e+37 }
 0xac2   :  { %v753_v45 = vor.u32 1.1754944e-38, %v752_v37  ;;  %vm751_vm9 = vcmp.eq.f32.partialorder %v750_v39, 8.507059e+37 }
 0xac5   :  { %v1644_v14 = vpop.eup %1643 }
 0xac6   :  { %v793_v15 = vmul.f32 %v1644_v14, %v791_v11  ;;  %v1646_v18 = vpop.eup %1645  ;;  %vm798_vm1 = vweird.f32 %v1644_v14 }
 0xac7   :  { %v742_v21 = vmul.f32 %v1646_v18, %v740_v13  ;;  %vm799_vm4 = vmor %vm797_vm2, %vm798_vm1  ;;  %vm747_vm6 = vweird.f32 %v1646_v18 }
 0xac8   :  { %v794_v16 = vsub.f32 1.0, %v793_v15  ;;  %vm748_vm8 = vmor %vm746_vm7, %vm747_vm6 }
 0xac9   :  { %v743_v23 = vsub.f32 1.0, %v742_v21 }
 0xaca   :  { %v795_v20 = vmul.f32 %v1644_v14, %v794_v16 }
 0xacb   :  { %v744_v27 = vmul.f32 %v1646_v18, %v743_v23 }
 0xacc   :  { %v796_v22 = vadd.f32 %v1644_v14, %v795_v20 }
 0xacd   :  { %v745_v34 = vadd.f32 %v1646_v18, %v744_v27 }
 0xace   :  { %v800_v26 = vsel %vm799_vm4, %v1644_v14, %v796_v22 }
 0xacf   :  { %v805_v30 = vsel %vm802_vm5, %v804_v28, %v800_v26  ;;  %v749_v44 = vsel %vm748_vm8, %v1646_v18, %v745_v34 }
 0xad0   :  { %v754_v49 = vsel %vm751_vm9, %v753_v45, %v749_v44  ;;  %v811_v29 = vmul.f32 %v809_v52, %v805_v30 }
 0xad1   :  { %v757_v56 = vmul.f32 %v754_v49, %v2115_v33 }
 0xb26   :  { %v814_v31 = vpop.permute.xlu0 %813 }
 0xb27   :  { %v816_v32 = vmul.f32 %v814_v31, %v805_v30 }
 0xb29   :  { %818 = vrot.lane.b32.xlu2 %v816_v32, %s1875_s21 }
 0xb2e   :  { %v760_v47 = vpop.permute.xlu1 %759 }
 0xb2f   :  { %v762_v50 = vmul.f32 %v760_v47, %v754_v49 }
 0xb31   :  { %764 = vrot.lane.b32.xlu0 %v762_v50, %s1875_s21 }
 0xb83   :  { %v819_v53 = vpop.permute.xlu2 %818 }
 0xb84   :  { %v2146_v55 = vadd.f32 %v819_v53, %v811_v29 }
 0xb86   :  { %1647 = vtanh.f32 %v2146_v55  ;;  %v944_v47 = vrot.slane %v2146_v55, 6 }
 0xb8c   :  { %v1648_v38 = vpop.eup %1647 }
 0xb8d   :  { %824 = vrot.lane.b32.xlu1 %v1648_v38, %s1875_s21 }
 0xba3   :  { %v765_v57 = vpop.permute.xlu0 %764 }
 0xba4   :  { %v2151_v58 = vadd.f32 %v765_v57, %v757_v56 }
 0xba6   :  { %1649 = vtanh.f32 %v2151_v58 }
 0xbac   :  { %v1650_v59 = vpop.eup %1649 }
 0xbad   :  { %770 = vrot.lane.b32.xlu2 %v1650_v59, %s1875_s21 }
 0xbff   :  { %v825_v54 = vpop.permute.xlu1 %824 }
 0xc00   :  { %v827_v46 = vmul.f32 %v825_v54, %v805_v30 }
 0xc02   :  { %v828_v60 = vpack.c.bf16 %v827_v46, %v827_v46 }
 0xc04   :  { %830 = vrot.lane.b32.xlu0 %v828_v60, %s1865_s29 }
 0xc07   :  { %v771_v61 = vpop.permute.xlu2 %770 }
 0xc08   :  { %v773_v62 = vmul.f32 %v771_v61, %v754_v49 }
 0xc0a   :  { %v848_v63 = vpack.c.bf16 %v773_v62, %v773_v62 }
 0xc0c   :  { %850 = vrot.lane.b32.xlu1 %v848_v63, %s1865_s29 }
 0xc76   :  { %v831_v1 = vpop.permute.xlu0 %830 }
 0xc77   :  { %1528 = vmatmul.msk.bf16.vlgmr.msrb.gmra.mxu1 %vm215_vm3, %v831_v1  ;;  %1531 = vmatmul.msk.bf16.vlgmr.msrb.gmra.mxu3 %vm215_vm3, %v831_v1 }
 0xc78   :  { %1184 = vmatpush.bf16.msrb.mxu1 %v2015_v41  ;;  %1269 = vmatpush.bf16.msrb.mxu3 %v2056_v35 }
 0xc7c   :  { %1185 = vmatpush.bf16.msrb.mxu1 %v2021_v43  ;;  %1270 = vmatpush.bf16.msrb.mxu3 %v2059_v36 }
 0xc7e   :  { %v851_v33 = vpop.permute.xlu1 %850 }
 0xc7f   :  { %1529 = vmatmul.msk.bf16.vlgmr.msrb.gmra.mxu2 %vm215_vm3, %v851_v33 }
 0xc80   :  { %1249 = vmatpush.bf16.msrb.mxu2 %v2013_v40 }
 0xc84   :  { %1250 = vmatpush.bf16.msrb.mxu2 %v2019_v42 }
 0xcf4   :  { %v844_v2 = vpop.f32.mrf.mxu1 }
 0xcf5   :  { %v845_v41 = vadd.f32 %v2039_v48, %v844_v2 }
 0xcfa   :  { %v915_v3 = vpop.f32.mrf.mxu3 }
 0xcfb   :  { %v920_v4 = vrot.slane %v915_v3, 6 }
 0xcfc   :  { %v846_v5 = vpop.f32.mrf.mxu1 }
 0xcfd   :  { %v922_v6 = vadd.f32 %v920_v4, %v2137_v0 }
 0xcff   :  { %1651 = vtanh.f32 %v922_v6  ;;  %v1532_v42 = vmul.f32 -1.442695, %v922_v6 }
 0xd02   :  { %v864_v35 = vpop.f32.mrf.mxu2  ;;  %v917_v43 = vpop.f32.mrf.mxu3 }
 0xd03   :  { %v868_v7 = vadd.f32 %v864_v35, %v845_v41 }
 0xd05   :  { %v1652_v36 = vpop.eup %1651  ;;  %1653 = vtanh.f32 %v868_v7  ;;  %v1530_v10 = vmul.f32 -1.442695, %v868_v7 }
 0xd06   :  { %948 = vrot.lane.b32.xlu2 %v1652_v36, %s1875_s21  ;;  %1655 = vpow2.f32 %v1532_v42 }
 0xd0a   :  { %v866_v19 = vpop.f32.mrf.mxu2 }
 0xd0b   :  { %v1654_v40 = vpop.eup %1653 }
 0xd0c   :  { %891 = vrot.lane.b32.xlu0 %v1654_v40, %s1875_s21  ;;  %v1656_v8 = vpop.eup %1655 }
 0xd0d   :  { %v926_v9 = vadd.f32 1.0, %v1656_v8 }
 0xd0f   :  { %1657 = vrcp.f32 %v926_v9  ;;  %v938_v14 = vand.u32 2147483648, %v926_v9  ;;  %vm932_vm11 = vweird.f32 %v926_v9  ;;  %v936_v16 = vand.u32 2147483647, %v926_v9 }
 0xd10   :  { %1659 = vpow2.f32 %v1530_v10 }
 0xd11   :  { %v939_v21 = vor.u32 1.1754944e-38, %v938_v14  ;;  %vm937_vm13 = vcmp.eq.f32.partialorder %v936_v16, 8.507059e+37 }
 0xd15   :  { %v1658_v17 = vpop.eup %1657 }
 0xd16   :  { %v928_v51 = vmul.f32 %v1658_v17, %v926_v9  ;;  %vm933_vm10 = vweird.f32 %v1658_v17  ;;  %v1660_v15 = vpop.eup %1659 }
 0xd17   :  { %vm934_vm12 = vmor %vm932_vm11, %vm933_vm10  ;;  %v872_v20 = vadd.f32 1.0, %v1660_v15 }
 0xd18   :  { %v929_v11 = vsub.f32 1.0, %v928_v51 }
 0xd19   :  { %1661 = vrcp.f32 %v872_v20  ;;  %v884_v31 = vand.u32 2147483648, %v872_v20  ;;  %vm878_vm15 = vweird.f32 %v872_v20  ;;  %v882_v32 = vand.u32 2147483647, %v872_v20 }
 0xd1a   :  { %v930_v12 = vmul.f32 %v1658_v17, %v929_v11 }
 0xd1b   :  { %v885_v37 = vor.u32 1.1754944e-38, %v884_v31  ;;  %vm883_vm1 = vcmp.eq.f32.partialorder %v882_v32, 8.507059e+37 }
 0xd1c   :  { %v931_v13 = vadd.f32 %v1658_v17, %v930_v12 }
 0xd1e   :  { %v935_v18 = vsel %vm934_vm12, %v1658_v17, %v931_v13 }
 0xd1f   :  { %v940_v23 = vsel %vm937_vm13, %v939_v21, %v935_v18  ;;  %v1662_v25 = vpop.eup %1661 }
 0xd20   :  { %v874_v26 = vmul.f32 %v1662_v25, %v872_v20  ;;  %vm879_vm14 = vweird.f32 %v1662_v25  ;;  %v946_v49 = vmul.f32 %v944_v47, %v940_v23 }
 0xd21   :  { %vm880_vm0 = vmor %vm878_vm15, %vm879_vm14 }
 0xd22   :  { %v875_v27 = vsub.f32 1.0, %v874_v26 }
 0xd24   :  { %v876_v28 = vmul.f32 %v1662_v25, %v875_v27 }
 0xd26   :  { %v877_v30 = vadd.f32 %v1662_v25, %v876_v28 }
 0xd28   :  { %v881_v34 = vsel %vm880_vm0, %v1662_v25, %v877_v30 }
 0xd29   :  { %v886_v44 = vsel %vm883_vm1, %v885_v37, %v881_v34 }
 0xd2a   :  { %v889_v29 = vmul.f32 %v886_v44, %v2151_v58 }
 0xd60   :  { %v949_v22 = vpop.permute.xlu2 %948 }
 0xd61   :  { %v951_v24 = vmul.f32 %v949_v22, %v940_v23 }
 0xd63   :  { %953 = vrot.lane.b32.xlu1 %v951_v24, %s1875_s21 }
 0xd7e   :  { %v892_v39 = vpop.permute.xlu0 %891 }
 0xd7f   :  { %v894_v45 = vmul.f32 %v892_v39, %v886_v44 }
 0xd81   :  { %896 = vrot.lane.b32.xlu2 %v894_v45, %s1875_s21 }
 0xdd5   :  { %v954_v50 = vpop.permute.xlu1 %953 }
 0xdd6   :  { %v2173_v52 = vadd.f32 %v954_v50, %v946_v49 }
 0xdd8   :  { %1663 = vtanh.f32 %v2173_v52  ;;  %v1080_v45 = vrot.slane %v2173_v52, 6 }
 0xddb   :  { %v897_v53 = vpop.permute.xlu2 %896 }
 0xddc   :  { %v2177_v38 = vadd.f32 %v897_v53, %v889_v29 }
 0xdde   :  { %v1664_v56 = vpop.eup %1663  ;;  %1665 = vtanh.f32 %v2177_v38 }
 0xddf   :  { %959 = vrot.lane.b32.xlu0 %v1664_v56, %s1875_s21 }
 0xde4   :  { %v1666_v57 = vpop.eup %1665 }
 0xde5   :  { %902 = vrot.lane.b32.xlu1 %v1666_v57, %s1875_s21 }
 0xe51   :  { %v960_v55 = vpop.permute.xlu0 %959 }
 0xe52   :  { %v962_v59 = vmul.f32 %v960_v55, %v940_v23 }
 0xe54   :  { %v963_v54 = vpack.c.bf16 %v962_v59, %v962_v59 }
 0xe56   :  { %v965_v46 = vrot.slane %v963_v54, 1 }
 0xe57   :  { %v903_v60 = vpop.permute.xlu1 %902 }
 0xe58   :  { %v905_v61 = vmul.f32 %v903_v60, %v886_v44  ;;  %966 = vrot.lane.b32.xlu2 %v965_v46, %s1865_s29 }
 0xe5a   :  { %v984_v58 = vpack.c.bf16 %v905_v61, %v905_v61 }
 0xe5c   :  { %986 = vrot.lane.b32.xlu0 %v984_v58, %s1865_s29 }
 0xeb2   :  { %v967_v62 = vpop.permute.xlu2 %966 }
 0xeb3   :  { %1533 = vmatmul.msk.bf16.vlgmr.msra.gmra.mxu0 %vm215_vm3, %v967_v62  ;;  %1536 = vmatmul.msk.bf16.vlgmr.msra.gmra.mxu2 %vm215_vm3, %v967_v62 }
 0xece   :  { %v987_v63 = vpop.permute.xlu0 %986 }
 0xecf   :  { %1534 = vmatmul.msk.bf16.vlgmr.msra.gmra.mxu1 %vm215_vm3, %v987_v63 }
 0xf30   :  { %v980_v1 = vpop.f32.mrf.mxu0 }
 0xf31   :  { %v981_v41 = vadd.f32 %v2039_v48, %v980_v1 }
 0xf36   :  { %v1051_v33 = vpop.f32.mrf.mxu2 }
 0xf37   :  { %v1056_v2 = vrot.slane %v1051_v33, 4 }
 0xf38   :  { %v982_v3 = vpop.f32.mrf.mxu0 }
 0xf39   :  { %v1058_v4 = vadd.f32 %v1056_v2, %v2137_v0  ;;  %v2212_v3 = vld [vmem:[%s2299_s7] ss:$0 sm:$0xff] }
 0xf3b   :  { %1667 = vtanh.f32 %v1058_v4  ;;  %v1537_v40 = vmul.f32 -1.442695, %v1058_v4 }
 0xf3e   :  { %v1053_v5 = vpop.f32.mrf.mxu2 }
 0xf41   :  { %v1668_v6 = vpop.eup %1667 }
 0xf42   :  { %1084 = vrot.lane.b32.xlu1 %v1668_v6, %s1875_s21 }
 0xf4c   :  { %v1000_v35 = vpop.f32.mrf.mxu1 }
 0xf4d   :  { %v1004_v43 = vadd.f32 %v1000_v35, %v981_v41 }
 0xf4f   :  { %1669 = vtanh.f32 %v1004_v43  ;;  %v1535_v19 = vmul.f32 -1.442695, %v1004_v43 }
 0xf51   :  { %1671 = vpow2.f32 %v1535_v19 }
 0xf52   :  { %1673 = vpow2.f32 %v1537_v40 }
 0xf54   :  { %v1002_v7 = vpop.f32.mrf.mxu1 }
 0xf55   :  { %v1670_v36 = vpop.eup %1669 }
 0xf56   :  { %1027 = vrot.lane.b32.xlu2 %v1670_v36, %s1875_s21 }
 0xf57   :  { %v1672_v42 = vpop.eup %1671 }
 0xf58   :  { %v1008_v8 = vadd.f32 1.0, %v1672_v42  ;;  %v1674_v9 = vpop.eup %1673 }
 0xf59   :  { %v1062_v17 = vadd.f32 1.0, %v1674_v9 }
 0xf5a   :  { %1675 = vrcp.f32 %v1008_v8  ;;  %v1020_v18 = vand.u32 2147483648, %v1008_v8  ;;  %vm1014_vm4 = vweird.f32 %v1008_v8  ;;  %v1018_v20 = vand.u32 2147483647, %v1008_v8 }
 0xf5b   :  { %1677 = vrcp.f32 %v1062_v17  ;;  %v1074_v24 = vand.u32 2147483648, %v1062_v17  ;;  %vm1068_vm8 = vweird.f32 %v1062_v17  ;;  %v1072_v25 = vand.u32 2147483647, %v1062_v17 }
 0xf5c   :  { %v1021_v23 = vor.u32 1.1754944e-38, %v1020_v18  ;;  %vm1019_vm7 = vcmp.eq.f32.partialorder %v1018_v20, 8.507059e+37 }
 0xf5d   :  { %v1075_v31 = vor.u32 1.1754944e-38, %v1074_v24  ;;  %vm1073_vm10 = vcmp.eq.f32.partialorder %v1072_v25, 8.507059e+37 }
 0xf60   :  { %v1676_v51 = vpop.eup %1675 }
 0xf61   :  { %v1010_v10 = vmul.f32 %v1676_v51, %v1008_v8  ;;  %v1678_v48 = vpop.eup %1677  ;;  %vm1015_vm2 = vweird.f32 %v1676_v51 }
 0xf62   :  { %v1064_v12 = vmul.f32 %v1678_v48, %v1062_v17  ;;  %vm1016_vm5 = vmor %vm1014_vm4, %vm1015_vm2  ;;  %vm1069_vm6 = vweird.f32 %v1678_v48 }
 0xf63   :  { %v1011_v11 = vsub.f32 1.0, %v1010_v10  ;;  %vm1070_vm9 = vmor %vm1068_vm8, %vm1069_vm6  ;;  %vm1411_vm8 = vcmask 123904  }
 0xf64   :  { %v1065_v14 = vsub.f32 1.0, %v1064_v12 }
 0xf65   :  { %v1012_v13 = vmul.f32 %v1676_v51, %v1011_v11 }
 0xf66   :  { %v1066_v16 = vmul.f32 %v1678_v48, %v1065_v14 }
 0xf67   :  { %v1013_v15 = vadd.f32 %v1676_v51, %v1012_v13 }
 0xf68   :  { %v1067_v22 = vadd.f32 %v1678_v48, %v1066_v16 }
 0xf69   :  { %v1017_v21 = vsel %vm1016_vm5, %v1676_v51, %v1013_v15 }
 0xf6a   :  { %v1022_v27 = vsel %vm1019_vm7, %v1021_v23, %v1017_v21  ;;  %v1071_v30 = vsel %vm1070_vm9, %v1678_v48, %v1067_v22 }
 0xf6b   :  { %v1076_v32 = vsel %vm1073_vm10, %v1075_v31, %v1071_v30  ;;  %v1025_v39 = vmul.f32 %v1022_v27, %v2177_v38 }
 0xf6c   :  { %v1082_v49 = vmul.f32 %v1080_v45, %v1076_v32 }
 0xfb0   :  { %v1028_v26 = vpop.permute.xlu2 %1027 }
 0xfb1   :  { %v1030_v28 = vmul.f32 %v1028_v26, %v1022_v27 }
 0xfb3   :  { %1032 = vrot.lane.b32.xlu1 %v1030_v28, %s1875_s21 }
 0xfb4   :  { %v1085_v34 = vpop.permute.xlu1 %1084 }
 0xfb5   :  { %v1087_v37 = vmul.f32 %v1085_v34, %v1076_v32 }
 0xfb7   :  { %1089 = vrot.lane.b32.xlu0 %v1087_v37, %s1875_s21 }
0x1025   :  { %v1033_v44 = vpop.permute.xlu1 %1032 }
0x1026   :  { %v2195_v47 = vadd.f32 %v1033_v44, %v1025_v39 }
0x1028   :  { %1679 = vtanh.f32 %v2195_v47 }
0x1029   :  { %v1090_v50 = vpop.permute.xlu0 %1089 }
0x102a   :  { %v2198_v29 = vadd.f32 %v1090_v50, %v1082_v49 }
0x102c   :  { %1681 = vtanh.f32 %v2198_v29 }
0x102e   :  { %v1680_v53 = vpop.eup %1679 }
0x102f   :  { %1038 = vrot.lane.b32.xlu0 %v1680_v53, %s1875_s21 }
0x1032   :  { %v1682_v56 = vpop.eup %1681 }
0x1033   :  { %1095 = vrot.lane.b32.xlu2 %v1682_v56, %s1875_s21 }
0x108d   :  { %v1096_v38 = vpop.permute.xlu2 %1095 }
0x108e   :  { %v1098_v57 = vmul.f32 %v1096_v38, %v1076_v32  ;;  %v1216_v32 = vrot.slane %v2198_v29, 6 }
0x1090   :  { %v1099_v55 = vpack.c.bf16 %v1098_v57, %v1098_v57 }
0x1092   :  { %v1101_v52 = vrot.slane %v1099_v55, 2 }
0x1094   :  { %1102 = vrot.lane.b32.xlu1 %v1101_v52, %s1865_s29 }
0x10a1   :  { %v1039_v59 = vpop.permute.xlu0 %1038 }
0x10a2   :  { %v1041_v54 = vmul.f32 %v1039_v59, %v1022_v27 }
0x10a4   :  { %v1120_v46 = vpack.c.bf16 %v1041_v54, %v1041_v54 }
0x10a6   :  { %1122 = vrot.lane.b32.xlu2 %v1120_v46, %s1865_s29 }
0x1100   :  { %v1123_v60 = vpop.permute.xlu2 %1122 }
0x1101   :  { %1539 = vmatmul.msk.bf16.vlgmr.msrb.gmra.mxu0 %vm215_vm3, %v1123_v60 }
0x1106   :  { %v1103_v61 = vpop.permute.xlu1 %1102 }
0x1107   :  { %1538 = vmatmul.msk.bf16.vlgmr.msra.gmra.mxu3 %vm215_vm3, %v1103_v61  ;;  %1541 = vmatmul.msk.bf16.vlgmr.msrb.gmra.mxu1 %vm215_vm3, %v1103_v61 }
0x117e   :  { %v1136_v58 = vpop.f32.mrf.mxu0 }
0x1184   :  { %v1187_v62 = vpop.f32.mrf.mxu1 }
0x1185   :  { %v1192_v63 = vrot.slane %v1187_v62, 2 }
0x1186   :  { %v1138_v1 = vpop.f32.mrf.mxu0 }
0x1187   :  { %v1194_v33 = vadd.f32 %v1192_v63, %v2137_v0 }
0x1189   :  { %1683 = vtanh.f32 %v1194_v33  ;;  %v1542_v0 = vmul.f32 -1.442695, %v1194_v33 }
0x118a   :  { %v1116_v2 = vpop.f32.mrf.mxu3 }
0x118b   :  { %v1117_v4 = vadd.f32 %v2212_v3, %v1116_v2 }
0x118c   :  { %v1189_v5 = vpop.f32.mrf.mxu1 }
0x118d   :  { %v1140_v6 = vadd.f32 %v1136_v58, %v1117_v4 }
0x118f   :  { %v1684_v41 = vpop.eup %1683  ;;  %1685 = vtanh.f32 %v1140_v6  ;;  %v1540_v7 = vmul.f32 -1.442695, %v1140_v6 }
0x1190   :  { %1220 = vrot.lane.b32.xlu0 %v1684_v41, %s1875_s21  ;;  %1687 = vpow2.f32 %v1542_v0 }
0x1191   :  { %1689 = vpow2.f32 %v1540_v7 }
0x1192   :  { %v1118_v35 = vpop.f32.mrf.mxu3 }
0x1195   :  { %v1686_v43 = vpop.eup %1685 }
0x1196   :  { %1163 = vrot.lane.b32.xlu1 %v1686_v43, %s1875_s21  ;;  %v1688_v36 = vpop.eup %1687 }
0x1197   :  { %v1198_v19 = vadd.f32 1.0, %v1688_v36  ;;  %v1690_v40 = vpop.eup %1689 }
0x1198   :  { %v1144_v42 = vadd.f32 1.0, %v1690_v40 }
0x1199   :  { %1691 = vrcp.f32 %v1198_v19  ;;  %v1210_v13 = vand.u32 2147483648, %v1198_v19  ;;  %vm1204_vm12 = vweird.f32 %v1198_v19  ;;  %v1208_v14 = vand.u32 2147483647, %v1198_v19 }
0x119a   :  { %1693 = vrcp.f32 %v1144_v42  ;;  %v1156_v23 = vand.u32 2147483648, %v1144_v42  ;;  %vm1150_vm0 = vweird.f32 %v1144_v42  ;;  %v1154_v25 = vand.u32 2147483647, %v1144_v42 }
0x119b   :  { %v1211_v18 = vor.u32 1.1754944e-38, %v1210_v13  ;;  %vm1209_vm14 = vcmp.eq.f32.partialorder %v1208_v14, 8.507059e+37 }
0x119c   :  { %v1157_v27 = vor.u32 1.1754944e-38, %v1156_v23  ;;  %vm1155_vm2 = vcmp.eq.f32.partialorder %v1154_v25, 8.507059e+37  ;;  %v1382_v23 = vld [vmem:[%s2304_s12 + $0x10] sm:$0xff]  ;;  %v1574_v25 = vld [vmem:[%s2301_s9] ss:$0 sm:$0xff] }
0x119f   :  { %v1692_v8 = vpop.eup %1691 }
0x11a0   :  { %v1200_v9 = vmul.f32 %v1692_v8, %v1198_v19  ;;  %v1694_v17 = vpop.eup %1693  ;;  %vm1205_vm11 = vweird.f32 %v1692_v8 }
0x11a1   :  { %v1146_v10 = vmul.f32 %v1694_v17, %v1144_v42  ;;  %vm1206_vm13 = vmor %vm1204_vm12, %vm1205_vm11  ;;  %vm1151_vm15 = vweird.f32 %v1694_v17 }
0x11a2   :  { %v1201_v51 = vsub.f32 1.0, %v1200_v9  ;;  %vm1152_vm1 = vmor %vm1150_vm0, %vm1151_vm15 }
0x11a3   :  { %v1147_v11 = vsub.f32 1.0, %v1146_v10  ;;  %v1317_v10 = vld [vmem:[%s2300_s8 + $0x18] sm:$0xff] }
0x11a4   :  { %v1202_v48 = vmul.f32 %v1692_v8, %v1201_v51  ;;  %1339 = vmatpush.msra.mxu0 %v1317_v10 }
0x11a5   :  { %v1148_v15 = vmul.f32 %v1694_v17, %v1147_v11  ;;  %v1315_v11 = vld [vmem:[%s2300_s8 + $0x8] sm:$0xff] }
0x11a6   :  { %v1203_v12 = vadd.f32 %v1692_v8, %v1202_v48  ;;  %v1316_v48 = vld [vmem:[%s2300_s8 + $0x10] sm:$0xff] }
0x11a7   :  { %v1149_v20 = vadd.f32 %v1694_v17, %v1148_v15  ;;  %1340 = vmatpush.msra.mxu0 %v1316_v48  ;;  %v1351_v15 = vld [vmem:[%s2302_s10 + $0x18] sm:$0xff] }
0x11a8   :  { %v1207_v16 = vsel %vm1206_vm13, %v1692_v8, %v1203_v12  ;;  %v1314_v12 = vld [vmem:[%s2300_s8] sm:$0xff]  ;;  %1371 = vmatpush.msra.mxu1 %v1351_v15 }
0x11a9   :  { %v1212_v22 = vsel %vm1209_vm14, %v1211_v18, %v1207_v16  ;;  %v1153_v26 = vsel %vm1152_vm1, %v1694_v17, %v1149_v20  ;;  %1341 = vmatpush.msra.mxu0 %v1315_v11  ;;  %v1350_v16 = vld [vmem:[%s2302_s10 + $0x10] sm:$0xff]  ;;  %v1349_v18 = vld [vmem:[%s2302_s10 + $0x8] sm:$0xff] }
0x11aa   :  { %v1158_v30 = vsel %vm1155_vm2, %v1157_v27, %v1153_v26  ;;  %v1218_v34 = vmul.f32 %v1216_v32, %v1212_v22  ;;  %1372 = vmatpush.msra.mxu1 %v1350_v16 }
0x11ab   :  { %v1161_v45 = vmul.f32 %v1158_v30, %v2195_v47  ;;  %1342 = vmatpush.msra.mxu0 %v1314_v12 }
0x11ac   :  { %1373 = vmatpush.msra.mxu1 %v1349_v18 }
0x1202   :  { %v1221_v21 = vpop.permute.xlu0 %1220 }
0x1203   :  { %v1223_v24 = vmul.f32 %v1221_v21, %v1212_v22  ;;  %v1348_v21 = vld [vmem:[%s2302_s10] sm:$0xff] }
0x1204   :  { %1374 = vmatpush.msra.mxu1 %v1348_v21 }
0x1205   :  { %1225 = vrot.lane.b32.xlu2 %v1223_v24, %s1875_s21  ;;  %v1381_v24 = vld [vmem:[%s2304_s12 + $0x8] sm:$0xff] }
0x1208   :  { %v1164_v28 = vpop.permute.xlu1 %1163 }
0x1209   :  { %v1166_v31 = vmul.f32 %v1164_v28, %v1158_v30 }
0x120b   :  { %1168 = vrot.lane.b32.xlu0 %v1166_v31, %s1875_s21  ;;  %v1575_v31 = vld [vmem:[%s2303_s11] ss:$0 sm:$0xff] }
0x125f   :  { %v1226_v37 = vpop.permute.xlu2 %1225 }
0x1260   :  { %v1228_v39 = vadd.f32 %v1226_v37, %v1218_v34 }
0x1262   :  { %1695 = vtanh.f32 %v1228_v39  ;;  %v1576_v39 = vld [vmem:[%s2305_s13] ss:$0 sm:$0xff] }
0x1268   :  { %v1696_v44 = vpop.eup %1695 }
0x1269   :  { %1231 = vrot.lane.b32.xlu1 %v1696_v44, %s1875_s21 }
0x127d   :  { %v1169_v49 = vpop.permute.xlu0 %1168 }
0x127e   :  { %v1171_v50 = vadd.f32 %v1169_v49, %v1161_v45 }
0x1280   :  { %1697 = vtanh.f32 %v1171_v50 }
0x1286   :  { %v1698_v53 = vpop.eup %1697 }
0x1287   :  { %1174 = vrot.lane.b32.xlu2 %v1698_v53, %s1875_s21 }
0x12db   :  { %v1232_v56 = vpop.permute.xlu1 %1231 }
0x12dc   :  { %v1234_v38 = vmul.f32 %v1232_v56, %v1212_v22  ;;  %v1383_v22 = vld [vmem:[%s2304_s12 + $0x18] sm:$0xff] }
0x12dd   :  { %1403 = vmatpush.msra.mxu2 %v1383_v22 }
0x12de   :  { %v1235_v57 = vpack.c.bf16 %v1234_v38, %v1234_v38 }
0x12df   :  { %1404 = vmatpush.msra.mxu2 %v1382_v23 }
0x12e0   :  { %v1237_v55 = vrot.slane %v1235_v57, 3 }
0x12e1   :  { %v1175_v29 = vpop.permute.xlu2 %1174  ;;  %1405 = vmatpush.msra.mxu2 %v1381_v24 }
0x12e2   :  { %v1177_v52 = vmul.f32 %v1175_v29, %v1158_v30  ;;  %1238 = vrot.lane.b32.xlu0 %v1237_v55, %s1865_s29  ;;  %v1380_v30 = vld [vmem:[%s2304_s12] sm:$0xff] }
0x12e3   :  { %1406 = vmatpush.msra.mxu2 %v1380_v30 }
0x12e4   :  { %v1256_v59 = vpack.c.bf16 %v1177_v52, %v1177_v52 }
0x12e6   :  { %1258 = vrot.lane.b32.xlu1 %v1256_v59, %s1865_s29 }
0x1354   :  { %v1239_v54 = vpop.permute.xlu0 %1238 }
0x1355   :  { %1543 = vmatmul.msk.bf16.vlgmr.msrb.gmra.mxu2 %vm215_vm3, %v1239_v54 }
0x1358   :  { %v1259_v47 = vpop.permute.xlu1 %1258 }
0x1359   :  { %1544 = vmatmul.msk.bf16.vlgmr.msrb.gmra.mxu3 %vm215_vm3, %v1259_v47 }
0x13d8   :  { %v1252_v46 = vpop.f32.mrf.mxu2 }
0x13d9   :  { %v1253_v60 = vadd.f32 %v2212_v3, %v1252_v46 }
0x13dc   :  { %v1272_v61 = vpop.f32.mrf.mxu3 }
0x13dd   :  { %v1276_v58 = vadd.f32 %v1272_v61, %v1253_v60 }
0x13df   :  { %1699 = vtanh.f32 %v1276_v58  ;;  %v1545_v33 = vmul.f32 -1.442695, %v1276_v58 }
0x13e0   :  { %v1254_v62 = vpop.f32.mrf.mxu2 }
0x13e1   :  { %1701 = vpow2.f32 %v1545_v33 }
0x13e4   :  { %v1274_v63 = vpop.f32.mrf.mxu3 }
0x13e5   :  { %v1700_v1 = vpop.eup %1699 }
0x13e6   :  { %1299 = vrot.lane.b32.xlu2 %v1700_v1, %s1875_s21 }
0x13e7   :  { %v1702_v2 = vpop.eup %1701 }
0x13e8   :  { %v1280_v4 = vadd.f32 1.0, %v1702_v2 }
0x13ea   :  { %1703 = vrcp.f32 %v1280_v4  ;;  %v1292_v3 = vand.u32 2147483648, %v1280_v4  ;;  %vm1286_vm5 = vweird.f32 %v1280_v4  ;;  %v1290_v0 = vand.u32 2147483647, %v1280_v4 }
0x13ec   :  { %v1293_v36 = vor.u32 1.1754944e-38, %v1292_v3  ;;  %vm1291_vm7 = vcmp.eq.f32.partialorder %v1290_v0, 8.507059e+37 }
0x13f0   :  { %v1704_v5 = vpop.eup %1703 }
0x13f1   :  { %v1282_v6 = vmul.f32 %v1704_v5, %v1280_v4  ;;  %vm1287_vm4 = vweird.f32 %v1704_v5 }
0x13f2   :  { %vm1288_vm6 = vmor %vm1286_vm5, %vm1287_vm4 }
0x13f3   :  { %v1283_v41 = vsub.f32 1.0, %v1282_v6 }
0x13f5   :  { %v1284_v35 = vmul.f32 %v1704_v5, %v1283_v41 }
0x13f7   :  { %v1285_v43 = vadd.f32 %v1704_v5, %v1284_v35  ;;  %v1578_v35 = vld [vmem:[%s2307_s15] ss:$0 sm:$0xff] }
0x13f9   :  { %v1289_v7 = vsel %vm1288_vm6, %v1704_v5, %v1285_v43  ;;  %v1577_v5 = vld [vmem:[%s2306_s14] ss:$0 sm:$0xff] }
0x13fa   :  { %v1294_v40 = vsel %vm1291_vm7, %v1293_v36, %v1289_v7 }
0x13fb   :  { %v1297_v8 = vmul.f32 %v1294_v40, %v1171_v50  ;;  %v1876_v50 = vmov 16.0  }
0x1440   :  { %v1300_v19 = vpop.permute.xlu2 %1299 }
0x1441   :  { %v1302_v42 = vmul.f32 %v1300_v19, %v1294_v40 }
0x1443   :  { %1304 = vrot.lane.b32.xlu0 %v1302_v42, %s1875_s21 }
0x14b5   :  { %v1305_v9 = vpop.permute.xlu0 %1304 }
0x14b6   :  { %v1307_v17 = vadd.f32 %v1305_v9, %v1297_v8 }
0x14b8   :  { %1705 = vtanh.f32 %v1307_v17 }
0x14b9   :  { %1707 = vrcp.f32 %v1876_v50 }
0x14be   :  { %v1706_v51 = vpop.eup %1705 }
0x14bf   :  { %1310 = vrot.lane.b32.xlu1 %v1706_v51, %s1875_s21  ;;  %v1708_v53 = vpop.eup %1707 }
0x14c0   :  { %v1416_v56 = vmul.f32 16.0, %v1708_v53  ;;  %vm1420_vm9 = vweird.f32 %v1708_v53 }
0x14c2   :  { %v1417_v38 = vsub.f32 1.0, %v1416_v56 }
0x14c4   :  { %v1418_v57 = vmul.f32 %v1708_v53, %v1417_v38 }
0x14c6   :  { %v1419_v55 = vadd.f32 %v1708_v53, %v1418_v57 }
0x14c8   :  { %v1421_v29 = vsel %vm1420_vm9, %v1708_v53, %v1419_v55 }
0x1531   :  { %v1311_v13 = vpop.permute.xlu1 %1310 }
0x1532   :  { %v1313_v14 = vmul.f32 %v1311_v13, %v1294_v40 }
0x1534   :  { %1323 = vrot.lane.b32.xlu2 %v1313_v14, %s1865_s29 }
0x158e   :  { %v1324_v20 = vpop.permute.xlu2 %1323 }
0x158f   :  { %1546 = vmatmul.msk.f32.vlgmr.msra.gmra.mxu0 %vm215_vm3, %v1324_v20 }
0x160c   :  { %v1344_v26 = vpop.f32.mrf.mxu0 }
0x160d   :  { %v1345_v27 = vadd.f32 %v1574_v25, %v1344_v26 }
0x160f   :  { %v1347_v28 = vmax.f32 %v1345_v27, 0.0 }
0x1611   :  { %1547 = vmatmul.msk.f32.vlgmr.msra.gmra.mxu1 %vm215_vm3, %v1347_v28 }
0x168e   :  { %v1376_v32 = vpop.f32.mrf.mxu1 }
0x168f   :  { %v1377_v34 = vadd.f32 %v1575_v31, %v1376_v32 }
0x1691   :  { %v1379_v37 = vmax.f32 %v1377_v34, 0.0 }
0x1693   :  { %1548 = vmatmul.msk.f32.vlgmr.msra.gmra.mxu2 %vm215_vm3, %v1379_v37 }
0x1716   :  { %v1408_v44 = vpop.f32.mrf.mxu2 }
0x1717   :  { %v1409_v45 = vadd.f32 %v1576_v39, %v1408_v44 }
0x1719   :  { %v1412_v49 = vsel %vm1411_vm8, %v1409_v45, 0.0 }
0x171a   :  { %1413 = vadd.xlane.f32.xlu0 %v1412_v49 }
0x178d   :  { %v1414_v52 = vpop.xlane.xlu0 %1413 }
0x178e   :  { %v1422_v59 = vmul.f32 %v1421_v29, %v1414_v52 }
0x1790   :  { %v1423_v54 = vsub.f32 %v1409_v45, %v1422_v59 }
0x1792   :  { %v1424_v47 = vmul.f32 %v1423_v54, %v1423_v54 }
0x1794   :  { %v1425_v46 = vsel %vm1411_vm8, %v1424_v47, 0.0 }
0x1795   :  { %1426 = vadd.xlane.f32.xlu1 %v1425_v46 }
0x1808   :  { %v1427_v60 = vpop.xlane.xlu1 %1426 }
0x1809   :  { %v1428_v61 = vmul.f32 %v1427_v60, %v1421_v29 }
0x180b   :  { %v1429_v58 = vadd.f32 1e-05, %v1428_v61 }
0x180d   :  { %1709 = vrsqrt.f32 %v1429_v58  ;;  %vm1436_vm10 = vweird.f32 %v1429_v58 }
0x1813   :  { %v1710_v62 = vpop.eup %1709 }
0x1814   :  { %v1431_v63 = vmul.f32 %v1710_v62, %v1429_v58  ;;  %vm1437_vm3 = vweird.f32 %v1710_v62 }
0x1815   :  { %vm1438_vm11 = vmor %vm1436_vm10, %vm1437_vm3 }
0x1816   :  { %v1432_v1 = vmul.f32 %v1710_v62, %v1431_v63 }
0x1818   :  { %v1433_v33 = vmul.f32 0.5, %v1432_v1 }
0x181a   :  { %v1434_v2 = vsub.f32 1.5, %v1433_v33 }
0x181c   :  { %v1435_v4 = vmul.f32 %v1710_v62, %v1434_v2 }
0x181e   :  { %v1439_v6 = vsel %vm1438_vm11, %v1710_v62, %v1435_v4 }
0x181f   :  { %v1440_v41 = vmul.f32 %v1439_v6, %v1423_v54 }
0x1821   :  { %v1445_v43 = vmul.f32 %v1577_v5, %v1440_v41 }
0x1823   :  { %v1450_v3 = vadd.f32 %v1578_v35, %v1445_v43 }
0x1825   :  { %1451 = vst.msk [vmem:[#allocation11] sm:$0x3] %vm1411_vm8, %v1450_v3 }
0x1826   :  { %1462 = dma.vmem_to_hbm [thread:$0]  %s1458_s28, 32, %s1460_s6, [#allocation4]  }
0x1827   :  { %1862 = dma.done.wait [#allocation4], 32  }
0x1828   :  { %1863 = vsyncadd [#allocation4], 4294967264 }
0x1829   :  { %1467 = vsyncpa [#allocation3], 1 }
0x182a   :  { %1468 = vsyncpa [#allocation6], 1 }
0x182b   :  { %1469 = vsyncpa [#allocation9], 1 }
0x182c   :  { %1470 = vsyncpa [#allocation4], 1 }

</bundles_post_ra>
